<compile_context>
chip_gen: v7x
topology: tpu7x:2x2x1
jax: 0.10.0
libtpu: 0.0.40
codegen_flags: <defaults>
</compile_context>

<pallas_src>
import math
import functools

import jax
import jax.numpy as jnp
from jax import lax
from jax.experimental import pallas as pl
from jax.experimental.pallas import tpu as pltpu


def _relative_shift(pos_score, roll_bit_masks, keep_row, zero_mask):
    """Transformer-XL relative shift of a [T, T] score block.

    Closed form of (pad zero col, view (T, T+1) as (T+1, T), drop first row):
        out[r, c] = pos[r,   c - r + T - 1]   if c <= r
                  = 0                         if c == r + 1
                  = pos[r+1, c - r - 2]       if c >= r + 2
    Built from log2(T) uniform lane rolls (XLU) selected per-row by the bits of
    s = (r + 1) mod T (precomputed boolean masks), plus one sublane roll.
    """
    a = pos_score
    for k, take in enumerate(roll_bit_masks):
        a = jnp.where(take, jnp.roll(a, 1 << k, axis=-1), a)  # lane rotate -> XLU
    # a[r, c] == pos[r, (c - 1 - r) mod T]
    a_down = jnp.roll(a, -1, axis=0)                          # a_down[r] = a[r+1]
    return jnp.where(keep_row, a, jnp.where(zero_mask, 0.0, a_down))


def _rmha_kernel(q_ref, k_ref, v_ref, p_ref,
                 wq_ref, wk_ref, wv_ref, wp_ref, wo_ref,
                 bq_ref, bk_ref, bv_ref, u_ref, vb_ref,
                 o_ref, *, num_heads, d_head, inv_sqrt_d):
    f32 = jnp.float32
    cdt = wq_ref.dtype                     # MXU operand dtype (f32 or bf16)
    T = q_ref.shape[1]

    # ---- Full-width input projections: [T, D] @ [D, D] (+bias), f32 accumulation.
    #      The 1/sqrt(d_model) scale is folded into q (u/v pre-scaled in the wrapper).
    q_full = (jnp.dot(q_ref[0], wq_ref[...], preferred_element_type=f32)
              + bq_ref[...]) * inv_sqrt_d
    k_full = jnp.dot(k_ref[0], wk_ref[...], preferred_element_type=f32) + bk_ref[...]
    v_full = jnp.dot(v_ref[0], wv_ref[...], preferred_element_type=f32) + bv_ref[...]
    p_full = jnp.dot(p_ref[0], wp_ref[...], preferred_element_type=f32)   # no bias

    qu = (q_full + u_ref[...]).astype(cdt)    # [T, D]
    qv = (q_full + vb_ref[...]).astype(cdt)
    k_c = k_full.astype(cdt)
    p_c = p_full.astype(cdt)
    v_c = v_full.astype(cdt)

    # ---- Relative-shift masks: built once, reused by every head.
    r = lax.broadcasted_iota(jnp.int32, (T, T), 0)
    c = lax.broadcasted_iota(jnp.int32, (T, T), 1)
    s = jnp.where(r + 1 == T, 0, r + 1)       # per-row circular roll amount
    nbits = max(1, (T - 1).bit_length())
    roll_bit_masks = [(jnp.right_shift(s, k) & 1) == 1 for k in range(nbits)]
    keep_row = c <= r
    zero_mask = c == r + 1

    dn = (((1,), (1,)), ((), ()))             # contract last dims (q @ k^T, no .T copy)

    # ---- Per-head attention (head axis unrolled inside the kernel body).
    ctx_heads = []
    for h in range(num_heads):
        sl = slice(h * d_head, (h + 1) * d_head)
        content = lax.dot_general(qu[:, sl], k_c[:, sl], dn,
                                  preferred_element_type=f32)            # [T, T]
        pos_raw = lax.dot_general(qv[:, sl], p_c[:, sl], dn,
                                  preferred_element_type=f32)            # [T, T]
        score = content + _relative_shift(pos_raw, roll_bit_masks,
                                          keep_row, zero_mask)
        score = score - jnp.max(score, axis=-1, keepdims=True)
        e = jnp.exp(score)
        attn = e * pl.reciprocal(jnp.sum(e, axis=-1, keepdims=True), approx=True)
        # TODO(synk): dropout(p=0.1) is identity here (inference); mask=None path only.
        ctx_heads.append(jnp.dot(attn.astype(cdt), v_c[:, sl],
                                 preferred_element_type=f32))            # [T, Dh]

    # ---- Single full-K output projection + one lane-dense store.
    ctx = jnp.concatenate(ctx_heads, axis=-1).astype(cdt)                # [T, D]
    o_ref[0] = jnp.dot(ctx, wo_ref[...],
                       preferred_element_type=f32).astype(o_ref.dtype)


def relative_mha_pallas(query, key, value, pos_emb, params, *,
                        compute_dtype=jnp.bfloat16):
    B, T, D = query.shape
    H = params["num_heads"]
    Dh = D // H
    inv_sqrt_d = 1.0 / math.sqrt(D)
    cdt = compute_dtype

    # MXU operands (activations & weights) in compute_dtype; everything that feeds the
    # f32 accumulators (biases, u/v) stays f32 so elementwise math is f32 on all chips.
    q_in, k_in, v_in, p_in = (x.astype(cdt) for x in (query, key, value, pos_emb))
    wq = params["wq"].astype(cdt)
    wk = params["wk"].astype(cdt)
    wv = params["wv"].astype(cdt)
    wp = params["wp"].astype(cdt)
    wo = params["wo"].astype(cdt)
    bq = params["bq"].reshape(1, D).astype(jnp.float32)
    bk = params["bk"].reshape(1, D).astype(jnp.float32)
    bv = params["bv"].reshape(1, D).astype(jnp.float32)
    # u/v biases flattened over heads and pre-scaled by 1/sqrt(d_model) (scale folding).
    u_flat = (params["u_bias"].reshape(1, D) * inv_sqrt_d).astype(jnp.float32)
    v_flat = (params["v_bias"].reshape(1, D) * inv_sqrt_d).astype(jnp.float32)

    seq_spec = pl.BlockSpec((1, T, D), lambda b: (b, 0, 0))
    w_spec = pl.BlockSpec((D, D), lambda b: (0, 0))      # constant index -> fetched once
    vec_spec = pl.BlockSpec((1, D), lambda b: (0, 0))

    kernel = functools.partial(_rmha_kernel, num_heads=H, d_head=Dh,
                               inv_sqrt_d=inv_sqrt_d)

    # TODO(synk): for realistic T (>=1024) tile the KV axis flash-style (online softmax)
    # and add a parallel query-tile grid axis when B == 1 so both v7x TensorCores work.
    return pl.pallas_call(
        kernel,
        out_shape=jax.ShapeDtypeStruct((B, T, D), jnp.float32),
        grid=(B,),
        in_specs=[seq_spec, seq_spec, seq_spec, seq_spec,
                  w_spec, w_spec, w_spec, w_spec, w_spec,
                  vec_spec, vec_spec, vec_spec, vec_spec, vec_spec],
        out_specs=pl.BlockSpec((1, T, D), lambda b: (b, 0, 0)),
        compiler_params=pltpu.CompilerParams(
            dimension_semantics=("parallel",),
            vmem_limit_bytes=32 * 1024 * 1024),
    )(q_in, k_in, v_in, p_in, wq, wk, wv, wp, wo,
      bq, bk, bv, u_flat, v_flat)


def init_params(key, d_model, num_heads):
    """Deterministic synthetic parameters (shapes match the PyTorch module)."""
    Dh = d_model // num_heads
    ks = jax.random.split(key, 10)
    w_scale = 1.0 / math.sqrt(d_model)

    def lin(k):
        return jax.random.normal(k, (d_model, d_model), jnp.float32) * w_scale

    return dict(
        num_heads=num_heads,
        wq=lin(ks[0]), bq=jax.random.normal(ks[1], (d_model,), jnp.float32) * 0.02,
        wk=lin(ks[2]), bk=jax.random.normal(ks[3], (d_model,), jnp.float32) * 0.02,
        wv=lin(ks[4]), bv=jax.random.normal(ks[5], (d_model,), jnp.float32) * 0.02,
        wp=lin(ks[6]),
        wo=lin(ks[7]),
        u_bias=jax.random.normal(ks[8], (num_heads, Dh), jnp.float32) * w_scale,
        v_bias=jax.random.normal(ks[9], (num_heads, Dh), jnp.float32) * w_scale,
    )


def reference(query, key, value, pos_emb, params):
    """Pure-JAX mirror of the PyTorch forward (mask=None, dropout=identity).
    Note: the PyTorch source has `batch_size = value.size()`; intended semantics
    (value.size(0)) are implemented."""
    B, T, D = query.shape
    H = params["num_heads"]
    Dh = D // H
    with jax.default_matmul_precision("float32"):
        q = (query @ params["wq"] + params["bq"]).reshape(B, T, H, Dh)
        k = (key @ params["wk"] + params["bk"]).reshape(B, T, H, Dh)
        v = (value @ params["wv"] + params["bv"]).reshape(B, T, H, Dh)
        pe = (pos_emb @ params["wp"]).reshape(B, T, H, Dh)

        content = jnp.einsum("bthd,bshd->bhts", q + params["u_bias"], k)
        pos_score = jnp.einsum("bthd,bshd->bhts", q + params["v_bias"], pe)

        zeros = jnp.zeros((B, H, T, 1), pos_score.dtype)
        padded = jnp.concatenate([zeros, pos_score], axis=-1).reshape(B, H, T + 1, T)
        pos_score = padded[:, :, 1:, :].reshape(B, H, T, T)

        score = (content + pos_score) / math.sqrt(D)
        attn = jax.nn.softmax(score, axis=-1)
        # v is [B, T, H, Dh] here (not permuted), hence "bshd" below.
        ctx = jnp.einsum("bhts,bshd->bthd", attn, v).reshape(B, T, D)
        return ctx @ params["wo"]


if __name__ == "__main__":
    B, T, D, H = 2, 16, 128, 4  # batch, seq, d_model, num_heads (d_head = 32)

    root = jax.random.PRNGKey(0)
    kq, kk, kv, kp, kparam = jax.random.split(root, 5)
    q_in = jax.random.normal(kq, (B, T, D), jnp.float32)
    k_in = jax.random.normal(kk, (B, T, D), jnp.float32)
    v_in = jax.random.normal(kv, (B, T, D), jnp.float32)
    pos_in = jax.random.normal(kp, (B, T, D), jnp.float32)
    params = init_params(kparam, D, H)

    ref = jax.block_until_ready(reference(q_in, k_in, v_in, pos_in, params))

    # f32 MXU operands: tighter check against the f32 reference.
    out_f32 = jax.block_until_ready(
        relative_mha_pallas(q_in, k_in, v_in, pos_in, params,
                            compute_dtype=jnp.float32))
    assert out_f32.shape == (B, T, D), out_f32.shape
    if not jnp.allclose(out_f32, ref, atol=3e-2, rtol=3e-2):
        max_err = float(jnp.max(jnp.abs(out_f32 - ref)))
        raise AssertionError(f"f32 Pallas output mismatch vs reference, max abs err {max_err}")

    # bf16 MXU operands (v6e/v7x fast path), f32 accumulation: looser check.
    out_bf16 = jax.block_until_ready(
        relative_mha_pallas(q_in, k_in, v_in, pos_in, params,
                            compute_dtype=jnp.bfloat16))
    if not jnp.allclose(out_bf16, ref, atol=1e-1, rtol=1e-1):
        max_err = float(jnp.max(jnp.abs(out_bf16 - ref)))
        raise AssertionError(f"bf16 Pallas output mismatch vs reference, max abs err {max_err}")

    print("KERNEL_OK")
</pallas_src>

<mosaic_0001>
module attributes {stable_mosaic.version = 11 : i64} {
  func.func @_rmha_kernel(%arg0: i32, %arg1: memref<1x16x128xf32, #tpu.memory_space<vmem>>, %arg2: memref<1x16x128xf32, #tpu.memory_space<vmem>>, %arg3: memref<1x16x128xf32, #tpu.memory_space<vmem>>, %arg4: memref<1x16x128xf32, #tpu.memory_space<vmem>>, %arg5: memref<128x128xf32, #tpu.memory_space<vmem>>, %arg6: memref<128x128xf32, #tpu.memory_space<vmem>>, %arg7: memref<128x128xf32, #tpu.memory_space<vmem>>, %arg8: memref<128x128xf32, #tpu.memory_space<vmem>>, %arg9: memref<128x128xf32, #tpu.memory_space<vmem>>, %arg10: memref<1x128xf32, #tpu.memory_space<vmem>>, %arg11: memref<1x128xf32, #tpu.memory_space<vmem>>, %arg12: memref<1x128xf32, #tpu.memory_space<vmem>>, %arg13: memref<1x128xf32, #tpu.memory_space<vmem>>, %arg14: memref<1x128xf32, #tpu.memory_space<vmem>>, %arg15: memref<1x16x128xf32, #tpu.memory_space<vmem>>) attributes {dimension_semantics = [#tpu.dimension_semantics<parallel>], iteration_bounds = array<i64: 2>, scalar_prefetch = 0 : i64, scratch_operands = 0 : i64, tpu.core_type = #tpu.core_type<tc>, window_params = [{transform_indices = @transform_0, window_bounds = array<i64: 1, 16, 128>}, {transform_indices = @transform_1, window_bounds = array<i64: 1, 16, 128>}, {transform_indices = @transform_2, window_bounds = array<i64: 1, 16, 128>}, {transform_indices = @transform_3, window_bounds = array<i64: 1, 16, 128>}, {pipeline_mode = #tpu.pipeline_mode<synchronous>, transform_indices = @transform_4, window_bounds = array<i64: 128, 128>}, {pipeline_mode = #tpu.pipeline_mode<synchronous>, transform_indices = @transform_5, window_bounds = array<i64: 128, 128>}, {pipeline_mode = #tpu.pipeline_mode<synchronous>, transform_indices = @transform_6, window_bounds = array<i64: 128, 128>}, {pipeline_mode = #tpu.pipeline_mode<synchronous>, transform_indices = @transform_7, window_bounds = array<i64: 128, 128>}, {pipeline_mode = #tpu.pipeline_mode<synchronous>, transform_indices = @transform_8, window_bounds = array<i64: 128, 128>}, {pipeline_mode = #tpu.pipeline_mode<synchronous>, transform_indices = @transform_9, window_bounds = array<i64: 1, 128>}, {pipeline_mode = #tpu.pipeline_mode<synchronous>, transform_indices = @transform_10, window_bounds = array<i64: 1, 128>}, {pipeline_mode = #tpu.pipeline_mode<synchronous>, transform_indices = @transform_11, window_bounds = array<i64: 1, 128>}, {pipeline_mode = #tpu.pipeline_mode<synchronous>, transform_indices = @transform_12, window_bounds = array<i64: 1, 128>}, {pipeline_mode = #tpu.pipeline_mode<synchronous>, transform_indices = @transform_13, window_bounds = array<i64: 1, 128>}, {transform_indices = @transform_14, window_bounds = array<i64: 1, 16, 128>}]} {
    %c0 = arith.constant 0 : index
    %c0_0 = arith.constant 0 : index
    %c0_1 = arith.constant 0 : index
    %0 = vector.load %arg1[%c0, %c0_0, %c0_1] : memref<1x16x128xf32, #tpu.memory_space<vmem>>, vector<1x16x128xf32>
    %1 = vector.shape_cast %0 : vector<1x16x128xf32> to vector<16x128xf32>
    %c0_2 = arith.constant 0 : index
    %c0_3 = arith.constant 0 : index
    %2 = vector.load %arg5[%c0_2, %c0_3] : memref<128x128xf32, #tpu.memory_space<vmem>>, vector<128x128xf32>
    %cst = arith.constant dense<0.000000e+00> : vector<16x128xf32>
    %3 = tpu.matmul %1, %2, %cst {dimension_numbers = #tpu.dot_dimension_numbers<[1], [0], [0], [1], [0, 0, 1, 1], [], []>} : vector<16x128xf32>, vector<128x128xf32>, vector<16x128xf32> -> vector<16x128xf32>
    %c0_4 = arith.constant 0 : index
    %c0_5 = arith.constant 0 : index
    %4 = vector.load %arg10[%c0_4, %c0_5] : memref<1x128xf32, #tpu.memory_space<vmem>>, vector<1x128xf32>
    %5 = vector.broadcast %4 : vector<1x128xf32> to vector<16x128xf32>
    %6 = arith.addf %3, %5 : vector<16x128xf32>
    %cst_6 = arith.constant 0.0883883461 : f32
    %7 = vector.broadcast %cst_6 : f32 to vector<16x128xf32>
    %8 = arith.mulf %6, %7 : vector<16x128xf32>
    %c0_7 = arith.constant 0 : index
    %c0_8 = arith.constant 0 : index
    %c0_9 = arith.constant 0 : index
    %9 = vector.load %arg2[%c0_7, %c0_8, %c0_9] : memref<1x16x128xf32, #tpu.memory_space<vmem>>, vector<1x16x128xf32>
    %10 = vector.shape_cast %9 : vector<1x16x128xf32> to vector<16x128xf32>
    %c0_10 = arith.constant 0 : index
    %c0_11 = arith.constant 0 : index
    %11 = vector.load %arg6[%c0_10, %c0_11] : memref<128x128xf32, #tpu.memory_space<vmem>>, vector<128x128xf32>
    %cst_12 = arith.constant dense<0.000000e+00> : vector<16x128xf32>
    %12 = tpu.matmul %10, %11, %cst_12 {dimension_numbers = #tpu.dot_dimension_numbers<[1], [0], [0], [1], [0, 0, 1, 1], [], []>} : vector<16x128xf32>, vector<128x128xf32>, vector<16x128xf32> -> vector<16x128xf32>
    %c0_13 = arith.constant 0 : index
    %c0_14 = arith.constant 0 : index
    %13 = vector.load %arg11[%c0_13, %c0_14] : memref<1x128xf32, #tpu.memory_space<vmem>>, vector<1x128xf32>
    %14 = vector.broadcast %13 : vector<1x128xf32> to vector<16x128xf32>
    %15 = arith.addf %12, %14 : vector<16x128xf32>
    %c0_15 = arith.constant 0 : index
    %c0_16 = arith.constant 0 : index
    %c0_17 = arith.constant 0 : index
    %16 = vector.load %arg3[%c0_15, %c0_16, %c0_17] : memref<1x16x128xf32, #tpu.memory_space<vmem>>, vector<1x16x128xf32>
    %17 = vector.shape_cast %16 : vector<1x16x128xf32> to vector<16x128xf32>
    %c0_18 = arith.constant 0 : index
    %c0_19 = arith.constant 0 : index
    %18 = vector.load %arg7[%c0_18, %c0_19] : memref<128x128xf32, #tpu.memory_space<vmem>>, vector<128x128xf32>
    %cst_20 = arith.constant dense<0.000000e+00> : vector<16x128xf32>
    %19 = tpu.matmul %17, %18, %cst_20 {dimension_numbers = #tpu.dot_dimension_numbers<[1], [0], [0], [1], [0, 0, 1, 1], [], []>} : vector<16x128xf32>, vector<128x128xf32>, vector<16x128xf32> -> vector<16x128xf32>
    %c0_21 = arith.constant 0 : index
    %c0_22 = arith.constant 0 : index
    %20 = vector.load %arg12[%c0_21, %c0_22] : memref<1x128xf32, #tpu.memory_space<vmem>>, vector<1x128xf32>
    %21 = vector.broadcast %20 : vector<1x128xf32> to vector<16x128xf32>
    %22 = arith.addf %19, %21 : vector<16x128xf32>
    %c0_23 = arith.constant 0 : index
    %c0_24 = arith.constant 0 : index
    %c0_25 = arith.constant 0 : index
    %23 = vector.load %arg4[%c0_23, %c0_24, %c0_25] : memref<1x16x128xf32, #tpu.memory_space<vmem>>, vector<1x16x128xf32>
    %24 = vector.shape_cast %23 : vector<1x16x128xf32> to vector<16x128xf32>
    %c0_26 = arith.constant 0 : index
    %c0_27 = arith.constant 0 : index
    %25 = vector.load %arg8[%c0_26, %c0_27] : memref<128x128xf32, #tpu.memory_space<vmem>>, vector<128x128xf32>
    %cst_28 = arith.constant dense<0.000000e+00> : vector<16x128xf32>
    %26 = tpu.matmul %24, %25, %cst_28 {dimension_numbers = #tpu.dot_dimension_numbers<[1], [0], [0], [1], [0, 0, 1, 1], [], []>} : vector<16x128xf32>, vector<128x128xf32>, vector<16x128xf32> -> vector<16x128xf32>
    %c0_29 = arith.constant 0 : index
    %c0_30 = arith.constant 0 : index
    %27 = vector.load %arg13[%c0_29, %c0_30] : memref<1x128xf32, #tpu.memory_space<vmem>>, vector<1x128xf32>
    %28 = vector.broadcast %27 : vector<1x128xf32> to vector<16x128xf32>
    %29 = arith.addf %8, %28 : vector<16x128xf32>
    %c0_31 = arith.constant 0 : index
    %c0_32 = arith.constant 0 : index
    %30 = vector.load %arg14[%c0_31, %c0_32] : memref<1x128xf32, #tpu.memory_space<vmem>>, vector<1x128xf32>
    %31 = vector.broadcast %30 : vector<1x128xf32> to vector<16x128xf32>
    %32 = arith.addf %8, %31 : vector<16x128xf32>
    %33 = tpu.iota {dimensions = array<i32: 0>} : vector<16x16xi32>
    %34 = tpu.iota {dimensions = array<i32: 1>} : vector<16x16xi32>
    %c1_i32 = arith.constant 1 : i32
    %35 = vector.broadcast %c1_i32 : i32 to vector<16x16xi32>
    %36 = arith.addi %33, %35 : vector<16x16xi32>
    %c16_i32 = arith.constant 16 : i32
    %37 = vector.broadcast %c16_i32 : i32 to vector<16x16xi32>
    %38 = arith.cmpi eq, %36, %37 : vector<16x16xi32>
    %c1_i32_33 = arith.constant 1 : i32
    %39 = vector.broadcast %c1_i32_33 : i32 to vector<16x16xi32>
    %40 = arith.addi %33, %39 : vector<16x16xi32>
    %c0_i32 = arith.constant 0 : i32
    %41 = vector.broadcast %c0_i32 : i32 to vector<16x16xi32>
    %42 = arith.select %38, %41, %40 : vector<16x16xi1>, vector<16x16xi32>
    %c0_i32_34 = arith.constant 0 : i32
    %43 = vector.broadcast %c0_i32_34 : i32 to vector<16x16xi32>
    %44 = arith.shrsi %42, %43 : vector<16x16xi32>
    %c1_i32_35 = arith.constant 1 : i32
    %45 = vector.broadcast %c1_i32_35 : i32 to vector<16x16xi32>
    %46 = arith.andi %44, %45 : vector<16x16xi32>
    %c1_i32_36 = arith.constant 1 : i32
    %47 = vector.broadcast %c1_i32_36 : i32 to vector<16x16xi32>
    %48 = arith.cmpi eq, %46, %47 : vector<16x16xi32>
    %c1_i32_37 = arith.constant 1 : i32
    %49 = vector.broadcast %c1_i32_37 : i32 to vector<16x16xi32>
    %50 = arith.shrsi %42, %49 : vector<16x16xi32>
    %c1_i32_38 = arith.constant 1 : i32
    %51 = vector.broadcast %c1_i32_38 : i32 to vector<16x16xi32>
    %52 = arith.andi %50, %51 : vector<16x16xi32>
    %c1_i32_39 = arith.constant 1 : i32
    %53 = vector.broadcast %c1_i32_39 : i32 to vector<16x16xi32>
    %54 = arith.cmpi eq, %52, %53 : vector<16x16xi32>
    %c2_i32 = arith.constant 2 : i32
    %55 = vector.broadcast %c2_i32 : i32 to vector<16x16xi32>
    %56 = arith.shrsi %42, %55 : vector<16x16xi32>
    %c1_i32_40 = arith.constant 1 : i32
    %57 = vector.broadcast %c1_i32_40 : i32 to vector<16x16xi32>
    %58 = arith.andi %56, %57 : vector<16x16xi32>
    %c1_i32_41 = arith.constant 1 : i32
    %59 = vector.broadcast %c1_i32_41 : i32 to vector<16x16xi32>
    %60 = arith.cmpi eq, %58, %59 : vector<16x16xi32>
    %c3_i32 = arith.constant 3 : i32
    %61 = vector.broadcast %c3_i32 : i32 to vector<16x16xi32>
    %62 = arith.shrsi %42, %61 : vector<16x16xi32>
    %c1_i32_42 = arith.constant 1 : i32
    %63 = vector.broadcast %c1_i32_42 : i32 to vector<16x16xi32>
    %64 = arith.andi %62, %63 : vector<16x16xi32>
    %c1_i32_43 = arith.constant 1 : i32
    %65 = vector.broadcast %c1_i32_43 : i32 to vector<16x16xi32>
    %66 = arith.cmpi eq, %64, %65 : vector<16x16xi32>
    %67 = arith.cmpi sle, %34, %33 : vector<16x16xi32>
    %c1_i32_44 = arith.constant 1 : i32
    %68 = vector.broadcast %c1_i32_44 : i32 to vector<16x16xi32>
    %69 = arith.addi %33, %68 : vector<16x16xi32>
    %70 = arith.cmpi eq, %34, %69 : vector<16x16xi32>
    %71 = vector.extract_strided_slice %29 {offsets = [0, 0], sizes = [16, 32], strides = [1, 1]} : vector<16x128xf32> to vector<16x32xf32>
    %72 = vector.extract_strided_slice %15 {offsets = [0, 0], sizes = [16, 32], strides = [1, 1]} : vector<16x128xf32> to vector<16x32xf32>
    %cst_45 = arith.constant dense<0.000000e+00> : vector<16x16xf32>
    %73 = tpu.matmul %71, %72, %cst_45 {dimension_numbers = #tpu.dot_dimension_numbers<[1], [1], [0], [0], [0, 0, 1, 0], [], []>} : vector<16x32xf32>, vector<16x32xf32>, vector<16x16xf32> -> vector<16x16xf32>
    %74 = vector.extract_strided_slice %32 {offsets = [0, 0], sizes = [16, 32], strides = [1, 1]} : vector<16x128xf32> to vector<16x32xf32>
    %75 = vector.extract_strided_slice %26 {offsets = [0, 0], sizes = [16, 32], strides = [1, 1]} : vector<16x128xf32> to vector<16x32xf32>
    %cst_46 = arith.constant dense<0.000000e+00> : vector<16x16xf32>
    %76 = tpu.matmul %74, %75, %cst_46 {dimension_numbers = #tpu.dot_dimension_numbers<[1], [1], [0], [0], [0, 0, 1, 0], [], []>} : vector<16x32xf32>, vector<16x32xf32>, vector<16x16xf32> -> vector<16x16xf32>
    %77 = vector.extract_strided_slice %76 {offsets = [0, 15], sizes = [16, 1], strides = [1, 1]} : vector<16x16xf32> to vector<16x1xf32>
    %78 = vector.extract_strided_slice %76 {offsets = [0, 0], sizes = [16, 15], strides = [1, 1]} : vector<16x16xf32> to vector<16x15xf32>
    %79 = tpu.concatenate %77, %78 in 1 : vector<16x1xf32>, vector<16x15xf32> -> vector<16x16xf32>
    %80 = arith.select %48, %79, %76 : vector<16x16xi1>, vector<16x16xf32>
    %81 = vector.extract_strided_slice %80 {offsets = [0, 14], sizes = [16, 2], strides = [1, 1]} : vector<16x16xf32> to vector<16x2xf32>
    %82 = vector.extract_strided_slice %80 {offsets = [0, 0], sizes = [16, 14], strides = [1, 1]} : vector<16x16xf32> to vector<16x14xf32>
    %83 = tpu.concatenate %81, %82 in 1 : vector<16x2xf32>, vector<16x14xf32> -> vector<16x16xf32>
    %84 = arith.select %54, %83, %80 : vector<16x16xi1>, vector<16x16xf32>
    %85 = vector.extract_strided_slice %84 {offsets = [0, 12], sizes = [16, 4], strides = [1, 1]} : vector<16x16xf32> to vector<16x4xf32>
    %86 = vector.extract_strided_slice %84 {offsets = [0, 0], sizes = [16, 12], strides = [1, 1]} : vector<16x16xf32> to vector<16x12xf32>
    %87 = tpu.concatenate %85, %86 in 1 : vector<16x4xf32>, vector<16x12xf32> -> vector<16x16xf32>
    %88 = arith.select %60, %87, %84 : vector<16x16xi1>, vector<16x16xf32>
    %89 = vector.extract_strided_slice %88 {offsets = [0, 8], sizes = [16, 8], strides = [1, 1]} : vector<16x16xf32> to vector<16x8xf32>
    %90 = vector.extract_strided_slice %88 {offsets = [0, 0], sizes = [16, 8], strides = [1, 1]} : vector<16x16xf32> to vector<16x8xf32>
    %91 = tpu.concatenate %89, %90 in 1 : vector<16x8xf32>, vector<16x8xf32> -> vector<16x16xf32>
    %92 = arith.select %66, %91, %88 : vector<16x16xi1>, vector<16x16xf32>
    %93 = vector.extract_strided_slice %92 {offsets = [1, 0], sizes = [15, 16], strides = [1, 1]} : vector<16x16xf32> to vector<15x16xf32>
    %94 = vector.extract_strided_slice %92 {offsets = [0, 0], sizes = [1, 16], strides = [1, 1]} : vector<16x16xf32> to vector<1x16xf32>
    %95 = tpu.concatenate %93, %94 in 0 : vector<15x16xf32>, vector<1x16xf32> -> vector<16x16xf32>
    %cst_47 = arith.constant 0.000000e+00 : f32
    %96 = vector.broadcast %cst_47 : f32 to vector<16x16xf32>
    %97 = arith.select %70, %96, %95 : vector<16x16xi1>, vector<16x16xf32>
    %98 = arith.select %67, %92, %97 : vector<16x16xi1>, vector<16x16xf32>
    %99 = arith.addf %73, %98 : vector<16x16xf32>
    %cst_48 = arith.constant dense<0xFF800000> : vector<16xf32>
    %100 = vector.multi_reduction <maximumf>, %99, %cst_48 [1] : vector<16x16xf32> to vector<16xf32>
    %101 = vector.shape_cast %100 : vector<16xf32> to vector<16x1xf32>
    %102 = vector.broadcast %101 : vector<16x1xf32> to vector<16x16xf32>
    %103 = arith.subf %99, %102 : vector<16x16xf32>
    %104 = math.exp %103 : vector<16x16xf32>
    %cst_49 = arith.constant dense<0.000000e+00> : vector<16xf32>
    %105 = vector.multi_reduction <add>, %104, %cst_49 [1] : vector<16x16xf32> to vector<16xf32>
    %106 = vector.shape_cast %105 : vector<16xf32> to vector<16x1xf32>
    %107 = tpu.reciprocal %106 {approx = true} : vector<16x1xf32> -> vector<16x1xf32>
    %108 = vector.broadcast %107 : vector<16x1xf32> to vector<16x16xf32>
    %109 = arith.mulf %104, %108 : vector<16x16xf32>
    %110 = vector.extract_strided_slice %22 {offsets = [0, 0], sizes = [16, 32], strides = [1, 1]} : vector<16x128xf32> to vector<16x32xf32>
    %cst_50 = arith.constant dense<0.000000e+00> : vector<16x32xf32>
    %111 = tpu.matmul %109, %110, %cst_50 {dimension_numbers = #tpu.dot_dimension_numbers<[1], [0], [0], [1], [0, 0, 1, 1], [], []>} : vector<16x16xf32>, vector<16x32xf32>, vector<16x32xf32> -> vector<16x32xf32>
    %112 = vector.extract_strided_slice %29 {offsets = [0, 32], sizes = [16, 32], strides = [1, 1]} : vector<16x128xf32> to vector<16x32xf32>
    %113 = vector.extract_strided_slice %15 {offsets = [0, 32], sizes = [16, 32], strides = [1, 1]} : vector<16x128xf32> to vector<16x32xf32>
    %cst_51 = arith.constant dense<0.000000e+00> : vector<16x16xf32>
    %114 = tpu.matmul %112, %113, %cst_51 {dimension_numbers = #tpu.dot_dimension_numbers<[1], [1], [0], [0], [0, 0, 1, 0], [], []>} : vector<16x32xf32>, vector<16x32xf32>, vector<16x16xf32> -> vector<16x16xf32>
    %115 = vector.extract_strided_slice %32 {offsets = [0, 32], sizes = [16, 32], strides = [1, 1]} : vector<16x128xf32> to vector<16x32xf32>
    %116 = vector.extract_strided_slice %26 {offsets = [0, 32], sizes = [16, 32], strides = [1, 1]} : vector<16x128xf32> to vector<16x32xf32>
    %cst_52 = arith.constant dense<0.000000e+00> : vector<16x16xf32>
    %117 = tpu.matmul %115, %116, %cst_52 {dimension_numbers = #tpu.dot_dimension_numbers<[1], [1], [0], [0], [0, 0, 1, 0], [], []>} : vector<16x32xf32>, vector<16x32xf32>, vector<16x16xf32> -> vector<16x16xf32>
    %118 = vector.extract_strided_slice %117 {offsets = [0, 15], sizes = [16, 1], strides = [1, 1]} : vector<16x16xf32> to vector<16x1xf32>
    %119 = vector.extract_strided_slice %117 {offsets = [0, 0], sizes = [16, 15], strides = [1, 1]} : vector<16x16xf32> to vector<16x15xf32>
    %120 = tpu.concatenate %118, %119 in 1 : vector<16x1xf32>, vector<16x15xf32> -> vector<16x16xf32>
    %121 = arith.select %48, %120, %117 : vector<16x16xi1>, vector<16x16xf32>
    %122 = vector.extract_strided_slice %121 {offsets = [0, 14], sizes = [16, 2], strides = [1, 1]} : vector<16x16xf32> to vector<16x2xf32>
    %123 = vector.extract_strided_slice %121 {offsets = [0, 0], sizes = [16, 14], strides = [1, 1]} : vector<16x16xf32> to vector<16x14xf32>
    %124 = tpu.concatenate %122, %123 in 1 : vector<16x2xf32>, vector<16x14xf32> -> vector<16x16xf32>
    %125 = arith.select %54, %124, %121 : vector<16x16xi1>, vector<16x16xf32>
    %126 = vector.extract_strided_slice %125 {offsets = [0, 12], sizes = [16, 4], strides = [1, 1]} : vector<16x16xf32> to vector<16x4xf32>
    %127 = vector.extract_strided_slice %125 {offsets = [0, 0], sizes = [16, 12], strides = [1, 1]} : vector<16x16xf32> to vector<16x12xf32>
    %128 = tpu.concatenate %126, %127 in 1 : vector<16x4xf32>, vector<16x12xf32> -> vector<16x16xf32>
    %129 = arith.select %60, %128, %125 : vector<16x16xi1>, vector<16x16xf32>
    %130 = vector.extract_strided_slice %129 {offsets = [0, 8], sizes = [16, 8], strides = [1, 1]} : vector<16x16xf32> to vector<16x8xf32>
    %131 = vector.extract_strided_slice %129 {offsets = [0, 0], sizes = [16, 8], strides = [1, 1]} : vector<16x16xf32> to vector<16x8xf32>
    %132 = tpu.concatenate %130, %131 in 1 : vector<16x8xf32>, vector<16x8xf32> -> vector<16x16xf32>
    %133 = arith.select %66, %132, %129 : vector<16x16xi1>, vector<16x16xf32>
    %134 = vector.extract_strided_slice %133 {offsets = [1, 0], sizes = [15, 16], strides = [1, 1]} : vector<16x16xf32> to vector<15x16xf32>
    %135 = vector.extract_strided_slice %133 {offsets = [0, 0], sizes = [1, 16], strides = [1, 1]} : vector<16x16xf32> to vector<1x16xf32>
    %136 = tpu.concatenate %134, %135 in 0 : vector<15x16xf32>, vector<1x16xf32> -> vector<16x16xf32>
    %cst_53 = arith.constant 0.000000e+00 : f32
    %137 = vector.broadcast %cst_53 : f32 to vector<16x16xf32>
    %138 = arith.select %70, %137, %136 : vector<16x16xi1>, vector<16x16xf32>
    %139 = arith.select %67, %133, %138 : vector<16x16xi1>, vector<16x16xf32>
    %140 = arith.addf %114, %139 : vector<16x16xf32>
    %cst_54 = arith.constant dense<0xFF800000> : vector<16xf32>
    %141 = vector.multi_reduction <maximumf>, %140, %cst_54 [1] : vector<16x16xf32> to vector<16xf32>
    %142 = vector.shape_cast %141 : vector<16xf32> to vector<16x1xf32>
    %143 = vector.broadcast %142 : vector<16x1xf32> to vector<16x16xf32>
    %144 = arith.subf %140, %143 : vector<16x16xf32>
    %145 = math.exp %144 : vector<16x16xf32>
    %cst_55 = arith.constant dense<0.000000e+00> : vector<16xf32>
    %146 = vector.multi_reduction <add>, %145, %cst_55 [1] : vector<16x16xf32> to vector<16xf32>
    %147 = vector.shape_cast %146 : vector<16xf32> to vector<16x1xf32>
    %148 = tpu.reciprocal %147 {approx = true} : vector<16x1xf32> -> vector<16x1xf32>
    %149 = vector.broadcast %148 : vector<16x1xf32> to vector<16x16xf32>
    %150 = arith.mulf %145, %149 : vector<16x16xf32>
    %151 = vector.extract_strided_slice %22 {offsets = [0, 32], sizes = [16, 32], strides = [1, 1]} : vector<16x128xf32> to vector<16x32xf32>
    %cst_56 = arith.constant dense<0.000000e+00> : vector<16x32xf32>
    %152 = tpu.matmul %150, %151, %cst_56 {dimension_numbers = #tpu.dot_dimension_numbers<[1], [0], [0], [1], [0, 0, 1, 1], [], []>} : vector<16x16xf32>, vector<16x32xf32>, vector<16x32xf32> -> vector<16x32xf32>
    %153 = vector.extract_strided_slice %29 {offsets = [0, 64], sizes = [16, 32], strides = [1, 1]} : vector<16x128xf32> to vector<16x32xf32>
    %154 = vector.extract_strided_slice %15 {offsets = [0, 64], sizes = [16, 32], strides = [1, 1]} : vector<16x128xf32> to vector<16x32xf32>
    %cst_57 = arith.constant dense<0.000000e+00> : vector<16x16xf32>
    %155 = tpu.matmul %153, %154, %cst_57 {dimension_numbers = #tpu.dot_dimension_numbers<[1], [1], [0], [0], [0, 0, 1, 0], [], []>} : vector<16x32xf32>, vector<16x32xf32>, vector<16x16xf32> -> vector<16x16xf32>
    %156 = vector.extract_strided_slice %32 {offsets = [0, 64], sizes = [16, 32], strides = [1, 1]} : vector<16x128xf32> to vector<16x32xf32>
    %157 = vector.extract_strided_slice %26 {offsets = [0, 64], sizes = [16, 32], strides = [1, 1]} : vector<16x128xf32> to vector<16x32xf32>
    %cst_58 = arith.constant dense<0.000000e+00> : vector<16x16xf32>
    %158 = tpu.matmul %156, %157, %cst_58 {dimension_numbers = #tpu.dot_dimension_numbers<[1], [1], [0], [0], [0, 0, 1, 0], [], []>} : vector<16x32xf32>, vector<16x32xf32>, vector<16x16xf32> -> vector<16x16xf32>
    %159 = vector.extract_strided_slice %158 {offsets = [0, 15], sizes = [16, 1], strides = [1, 1]} : vector<16x16xf32> to vector<16x1xf32>
    %160 = vector.extract_strided_slice %158 {offsets = [0, 0], sizes = [16, 15], strides = [1, 1]} : vector<16x16xf32> to vector<16x15xf32>
    %161 = tpu.concatenate %159, %160 in 1 : vector<16x1xf32>, vector<16x15xf32> -> vector<16x16xf32>
    %162 = arith.select %48, %161, %158 : vector<16x16xi1>, vector<16x16xf32>
    %163 = vector.extract_strided_slice %162 {offsets = [0, 14], sizes = [16, 2], strides = [1, 1]} : vector<16x16xf32> to vector<16x2xf32>
    %164 = vector.extract_strided_slice %162 {offsets = [0, 0], sizes = [16, 14], strides = [1, 1]} : vector<16x16xf32> to vector<16x14xf32>
    %165 = tpu.concatenate %163, %164 in 1 : vector<16x2xf32>, vector<16x14xf32> -> vector<16x16xf32>
    %166 = arith.select %54, %165, %162 : vector<16x16xi1>, vector<16x16xf32>
    %167 = vector.extract_strided_slice %166 {offsets = [0, 12], sizes = [16, 4], strides = [1, 1]} : vector<16x16xf32> to vector<16x4xf32>
    %168 = vector.extract_strided_slice %166 {offsets = [0, 0], sizes = [16, 12], strides = [1, 1]} : vector<16x16xf32> to vector<16x12xf32>
    %169 = tpu.concatenate %167, %168 in 1 : vector<16x4xf32>, vector<16x12xf32> -> vector<16x16xf32>
    %170 = arith.select %60, %169, %166 : vector<16x16xi1>, vector<16x16xf32>
    %171 = vector.extract_strided_slice %170 {offsets = [0, 8], sizes = [16, 8], strides = [1, 1]} : vector<16x16xf32> to vector<16x8xf32>
    %172 = vector.extract_strided_slice %170 {offsets = [0, 0], sizes = [16, 8], strides = [1, 1]} : vector<16x16xf32> to vector<16x8xf32>
    %173 = tpu.concatenate %171, %172 in 1 : vector<16x8xf32>, vector<16x8xf32> -> vector<16x16xf32>
    %174 = arith.select %66, %173, %170 : vector<16x16xi1>, vector<16x16xf32>
    %175 = vector.extract_strided_slice %174 {offsets = [1, 0], sizes = [15, 16], strides = [1, 1]} : vector<16x16xf32> to vector<15x16xf32>
    %176 = vector.extract_strided_slice %174 {offsets = [0, 0], sizes = [1, 16], strides = [1, 1]} : vector<16x16xf32> to vector<1x16xf32>
    %177 = tpu.concatenate %175, %176 in 0 : vector<15x16xf32>, vector<1x16xf32> -> vector<16x16xf32>
    %cst_59 = arith.constant 0.000000e+00 : f32
    %178 = vector.broadcast %cst_59 : f32 to vector<16x16xf32>
    %179 = arith.select %70, %178, %177 : vector<16x16xi1>, vector<16x16xf32>
    %180 = arith.select %67, %174, %179 : vector<16x16xi1>, vector<16x16xf32>
    %181 = arith.addf %155, %180 : vector<16x16xf32>
    %cst_60 = arith.constant dense<0xFF800000> : vector<16xf32>
    %182 = vector.multi_reduction <maximumf>, %181, %cst_60 [1] : vector<16x16xf32> to vector<16xf32>
    %183 = vector.shape_cast %182 : vector<16xf32> to vector<16x1xf32>
    %184 = vector.broadcast %183 : vector<16x1xf32> to vector<16x16xf32>
    %185 = arith.subf %181, %184 : vector<16x16xf32>
    %186 = math.exp %185 : vector<16x16xf32>
    %cst_61 = arith.constant dense<0.000000e+00> : vector<16xf32>
    %187 = vector.multi_reduction <add>, %186, %cst_61 [1] : vector<16x16xf32> to vector<16xf32>
    %188 = vector.shape_cast %187 : vector<16xf32> to vector<16x1xf32>
    %189 = tpu.reciprocal %188 {approx = true} : vector<16x1xf32> -> vector<16x1xf32>
    %190 = vector.broadcast %189 : vector<16x1xf32> to vector<16x16xf32>
    %191 = arith.mulf %186, %190 : vector<16x16xf32>
    %192 = vector.extract_strided_slice %22 {offsets = [0, 64], sizes = [16, 32], strides = [1, 1]} : vector<16x128xf32> to vector<16x32xf32>
    %cst_62 = arith.constant dense<0.000000e+00> : vector<16x32xf32>
    %193 = tpu.matmul %191, %192, %cst_62 {dimension_numbers = #tpu.dot_dimension_numbers<[1], [0], [0], [1], [0, 0, 1, 1], [], []>} : vector<16x16xf32>, vector<16x32xf32>, vector<16x32xf32> -> vector<16x32xf32>
    %194 = vector.extract_strided_slice %29 {offsets = [0, 96], sizes = [16, 32], strides = [1, 1]} : vector<16x128xf32> to vector<16x32xf32>
    %195 = vector.extract_strided_slice %15 {offsets = [0, 96], sizes = [16, 32], strides = [1, 1]} : vector<16x128xf32> to vector<16x32xf32>
    %cst_63 = arith.constant dense<0.000000e+00> : vector<16x16xf32>
    %196 = tpu.matmul %194, %195, %cst_63 {dimension_numbers = #tpu.dot_dimension_numbers<[1], [1], [0], [0], [0, 0, 1, 0], [], []>} : vector<16x32xf32>, vector<16x32xf32>, vector<16x16xf32> -> vector<16x16xf32>
    %197 = vector.extract_strided_slice %32 {offsets = [0, 96], sizes = [16, 32], strides = [1, 1]} : vector<16x128xf32> to vector<16x32xf32>
    %198 = vector.extract_strided_slice %26 {offsets = [0, 96], sizes = [16, 32], strides = [1, 1]} : vector<16x128xf32> to vector<16x32xf32>
    %cst_64 = arith.constant dense<0.000000e+00> : vector<16x16xf32>
    %199 = tpu.matmul %197, %198, %cst_64 {dimension_numbers = #tpu.dot_dimension_numbers<[1], [1], [0], [0], [0, 0, 1, 0], [], []>} : vector<16x32xf32>, vector<16x32xf32>, vector<16x16xf32> -> vector<16x16xf32>
    %200 = vector.extract_strided_slice %199 {offsets = [0, 15], sizes = [16, 1], strides = [1, 1]} : vector<16x16xf32> to vector<16x1xf32>
    %201 = vector.extract_strided_slice %199 {offsets = [0, 0], sizes = [16, 15], strides = [1, 1]} : vector<16x16xf32> to vector<16x15xf32>
    %202 = tpu.concatenate %200, %201 in 1 : vector<16x1xf32>, vector<16x15xf32> -> vector<16x16xf32>
    %203 = arith.select %48, %202, %199 : vector<16x16xi1>, vector<16x16xf32>
    %204 = vector.extract_strided_slice %203 {offsets = [0, 14], sizes = [16, 2], strides = [1, 1]} : vector<16x16xf32> to vector<16x2xf32>
    %205 = vector.extract_strided_slice %203 {offsets = [0, 0], sizes = [16, 14], strides = [1, 1]} : vector<16x16xf32> to vector<16x14xf32>
    %206 = tpu.concatenate %204, %205 in 1 : vector<16x2xf32>, vector<16x14xf32> -> vector<16x16xf32>
    %207 = arith.select %54, %206, %203 : vector<16x16xi1>, vector<16x16xf32>
    %208 = vector.extract_strided_slice %207 {offsets = [0, 12], sizes = [16, 4], strides = [1, 1]} : vector<16x16xf32> to vector<16x4xf32>
    %209 = vector.extract_strided_slice %207 {offsets = [0, 0], sizes = [16, 12], strides = [1, 1]} : vector<16x16xf32> to vector<16x12xf32>
    %210 = tpu.concatenate %208, %209 in 1 : vector<16x4xf32>, vector<16x12xf32> -> vector<16x16xf32>
    %211 = arith.select %60, %210, %207 : vector<16x16xi1>, vector<16x16xf32>
    %212 = vector.extract_strided_slice %211 {offsets = [0, 8], sizes = [16, 8], strides = [1, 1]} : vector<16x16xf32> to vector<16x8xf32>
    %213 = vector.extract_strided_slice %211 {offsets = [0, 0], sizes = [16, 8], strides = [1, 1]} : vector<16x16xf32> to vector<16x8xf32>
    %214 = tpu.concatenate %212, %213 in 1 : vector<16x8xf32>, vector<16x8xf32> -> vector<16x16xf32>
    %215 = arith.select %66, %214, %211 : vector<16x16xi1>, vector<16x16xf32>
    %216 = vector.extract_strided_slice %215 {offsets = [1, 0], sizes = [15, 16], strides = [1, 1]} : vector<16x16xf32> to vector<15x16xf32>
    %217 = vector.extract_strided_slice %215 {offsets = [0, 0], sizes = [1, 16], strides = [1, 1]} : vector<16x16xf32> to vector<1x16xf32>
    %218 = tpu.concatenate %216, %217 in 0 : vector<15x16xf32>, vector<1x16xf32> -> vector<16x16xf32>
    %cst_65 = arith.constant 0.000000e+00 : f32
    %219 = vector.broadcast %cst_65 : f32 to vector<16x16xf32>
    %220 = arith.select %70, %219, %218 : vector<16x16xi1>, vector<16x16xf32>
    %221 = arith.select %67, %215, %220 : vector<16x16xi1>, vector<16x16xf32>
    %222 = arith.addf %196, %221 : vector<16x16xf32>
    %cst_66 = arith.constant dense<0xFF800000> : vector<16xf32>
    %223 = vector.multi_reduction <maximumf>, %222, %cst_66 [1] : vector<16x16xf32> to vector<16xf32>
    %224 = vector.shape_cast %223 : vector<16xf32> to vector<16x1xf32>
    %225 = vector.broadcast %224 : vector<16x1xf32> to vector<16x16xf32>
    %226 = arith.subf %222, %225 : vector<16x16xf32>
    %227 = math.exp %226 : vector<16x16xf32>
    %cst_67 = arith.constant dense<0.000000e+00> : vector<16xf32>
    %228 = vector.multi_reduction <add>, %227, %cst_67 [1] : vector<16x16xf32> to vector<16xf32>
    %229 = vector.shape_cast %228 : vector<16xf32> to vector<16x1xf32>
    %230 = tpu.reciprocal %229 {approx = true} : vector<16x1xf32> -> vector<16x1xf32>
    %231 = vector.broadcast %230 : vector<16x1xf32> to vector<16x16xf32>
    %232 = arith.mulf %227, %231 : vector<16x16xf32>
    %233 = vector.extract_strided_slice %22 {offsets = [0, 96], sizes = [16, 32], strides = [1, 1]} : vector<16x128xf32> to vector<16x32xf32>
    %cst_68 = arith.constant dense<0.000000e+00> : vector<16x32xf32>
    %234 = tpu.matmul %232, %233, %cst_68 {dimension_numbers = #tpu.dot_dimension_numbers<[1], [0], [0], [1], [0, 0, 1, 1], [], []>} : vector<16x16xf32>, vector<16x32xf32>, vector<16x32xf32> -> vector<16x32xf32>
    %235 = tpu.concatenate %111, %152, %193, %234 in 1 : vector<16x32xf32>, vector<16x32xf32>, vector<16x32xf32>, vector<16x32xf32> -> vector<16x128xf32>
    %c0_69 = arith.constant 0 : index
    %c0_70 = arith.constant 0 : index
    %236 = vector.load %arg9[%c0_69, %c0_70] : memref<128x128xf32, #tpu.memory_space<vmem>>, vector<128x128xf32>
    %cst_71 = arith.constant dense<0.000000e+00> : vector<16x128xf32>
    %237 = tpu.matmul %235, %236, %cst_71 {dimension_numbers = #tpu.dot_dimension_numbers<[1], [0], [0], [1], [0, 0, 1, 1], [], []>} : vector<16x128xf32>, vector<128x128xf32>, vector<16x128xf32> -> vector<16x128xf32>
    %c0_72 = arith.constant 0 : index
    %c0_73 = arith.constant 0 : index
    %c0_74 = arith.constant 0 : index
    %238 = vector.load %arg15[%c0_72, %c0_73, %c0_74] : memref<1x16x128xf32, #tpu.memory_space<vmem>>, vector<1x16x128xf32>
    %239 = vector.shape_cast %238 : vector<1x16x128xf32> to vector<16x128xf32>
    %240 = vector.shape_cast %237 : vector<16x128xf32> to vector<1x16x128xf32>
    tpu.vector_store %arg15[%c0_72, %c0_73, %c0_74], %240 {strides = array<i32>} : memref<1x16x128xf32, #tpu.memory_space<vmem>>, vector<1x16x128xf32>,
    return
  }
  func.func @transform_0(%arg0: i32) -> (i32, i32, i32) {
    %c0_i32 = arith.constant 0 : i32
    %c0_i32_0 = arith.constant 0 : i32
    %c0_i32_1 = arith.constant 0 : i32
    return %arg0, %c0_i32, %c0_i32_0 : i32, i32, i32
  }
  func.func @transform_1(%arg0: i32) -> (i32, i32, i32) {
    %c0_i32 = arith.constant 0 : i32
    %c0_i32_0 = arith.constant 0 : i32
    %c0_i32_1 = arith.constant 0 : i32
    return %arg0, %c0_i32, %c0_i32_0 : i32, i32, i32
  }
  func.func @transform_2(%arg0: i32) -> (i32, i32, i32) {
    %c0_i32 = arith.constant 0 : i32
    %c0_i32_0 = arith.constant 0 : i32
    %c0_i32_1 = arith.constant 0 : i32
    return %arg0, %c0_i32, %c0_i32_0 : i32, i32, i32
  }
  func.func @transform_3(%arg0: i32) -> (i32, i32, i32) {
    %c0_i32 = arith.constant 0 : i32
    %c0_i32_0 = arith.constant 0 : i32
    %c0_i32_1 = arith.constant 0 : i32
    return %arg0, %c0_i32, %c0_i32_0 : i32, i32, i32
  }
  func.func @transform_4(%arg0: i32) -> (i32, i32) {
    %c0_i32 = arith.constant 0 : i32
    %c0_i32_0 = arith.constant 0 : i32
    %c0_i32_1 = arith.constant 0 : i32
    return %c0_i32, %c0_i32_0 : i32, i32
  }
  func.func @transform_5(%arg0: i32) -> (i32, i32) {
    %c0_i32 = arith.constant 0 : i32
    %c0_i32_0 = arith.constant 0 : i32
    %c0_i32_1 = arith.constant 0 : i32
    return %c0_i32, %c0_i32_0 : i32, i32
  }
  func.func @transform_6(%arg0: i32) -> (i32, i32) {
    %c0_i32 = arith.constant 0 : i32
    %c0_i32_0 = arith.constant 0 : i32
    %c0_i32_1 = arith.constant 0 : i32
    return %c0_i32, %c0_i32_0 : i32, i32
  }
  func.func @transform_7(%arg0: i32) -> (i32, i32) {
    %c0_i32 = arith.constant 0 : i32
    %c0_i32_0 = arith.constant 0 : i32
    %c0_i32_1 = arith.constant 0 : i32
    return %c0_i32, %c0_i32_0 : i32, i32
  }
  func.func @transform_8(%arg0: i32) -> (i32, i32) {
    %c0_i32 = arith.constant 0 : i32
    %c0_i32_0 = arith.constant 0 : i32
    %c0_i32_1 = arith.constant 0 : i32
    return %c0_i32, %c0_i32_0 : i32, i32
  }
  func.func @transform_9(%arg0: i32) -> (i32, i32) {
    %c0_i32 = arith.constant 0 : i32
    %c0_i32_0 = arith.constant 0 : i32
    %c0_i32_1 = arith.constant 0 : i32
    return %c0_i32, %c0_i32_0 : i32, i32
  }
  func.func @transform_10(%arg0: i32) -> (i32, i32) {
    %c0_i32 = arith.constant 0 : i32
    %c0_i32_0 = arith.constant 0 : i32
    %c0_i32_1 = arith.constant 0 : i32
    return %c0_i32, %c0_i32_0 : i32, i32
  }
  func.func @transform_11(%arg0: i32) -> (i32, i32) {
    %c0_i32 = arith.constant 0 : i32
    %c0_i32_0 = arith.constant 0 : i32
    %c0_i32_1 = arith.constant 0 : i32
    return %c0_i32, %c0_i32_0 : i32, i32
  }
  func.func @transform_12(%arg0: i32) -> (i32, i32) {
    %c0_i32 = arith.constant 0 : i32
    %c0_i32_0 = arith.constant 0 : i32
    %c0_i32_1 = arith.constant 0 : i32
    return %c0_i32, %c0_i32_0 : i32, i32
  }
  func.func @transform_13(%arg0: i32) -> (i32, i32) {
    %c0_i32 = arith.constant 0 : i32
    %c0_i32_0 = arith.constant 0 : i32
    %c0_i32_1 = arith.constant 0 : i32
    return %c0_i32, %c0_i32_0 : i32, i32
  }
  func.func @transform_14(%arg0: i32) -> (i32, i32, i32) {
    %c0_i32 = arith.constant 0 : i32
    %c0_i32_0 = arith.constant 0 : i32
    %c0_i32_1 = arith.constant 0 : i32
    return %arg0, %c0_i32, %c0_i32_0 : i32, i32, i32
  }
}

</mosaic_0001>

<bundles_post_ra>
// kernel: tpu_custom_call.1
= control target key start
LH: loop header
LB: loop body
LE: loop exit
PB: predicated region body
PF: predicated region fallthrough
CT: control target
= control target key end

     0   :  { %s5285_s0 = inlined_call_operand.hbm [shape: f32[2,16,128], index: 0, kind: input, shape index: {}]   ;;  %s5286_s1 = inlined_call_operand.hbm [shape: f32[2,16,128], index: 1, kind: input, shape index: {}]   ;;  %s5287_s2 = inlined_call_operand.hbm [shape: f32[2,16,128], index: 2, kind: input, shape index: {}]   ;;  %s5288_s3 = inlined_call_operand.hbm [shape: f32[2,16,128], index: 3, kind: input, shape index: {}]   ;;  %s5289_s4 = inlined_call_operand.hbm [shape: f32[128,128], index: 4, kind: input, shape index: {}]   ;;  %s5290_s5 = inlined_call_operand.hbm [shape: f32[128,128], index: 5, kind: input, shape index: {}]   ;;  %s5291_s6 = inlined_call_operand.hbm [shape: f32[128,128], index: 6, kind: input, shape index: {}]   ;;  %s5292_s7 = inlined_call_operand.hbm [shape: f32[128,128], index: 7, kind: input, shape index: {}]   ;;  %s5293_s8 = inlined_call_operand.hbm [shape: f32[128,128], index: 8, kind: input, shape index: {}]   ;;  %s5294_s9 = inlined_call_operand.vmem [shape: f32[1,128], index: 9, kind: input, shape index: {}]   ;;  %s5295_s10 = inlined_call_operand.vmem [shape: f32[1,128], index: 10, kind: input, shape index: {}]   ;;  %s5296_s11 = inlined_call_operand.vmem [shape: f32[1,128], index: 11, kind: input, shape index: {}]   ;;  %s5297_s12 = inlined_call_operand.vmem [shape: f32[1,128], index: 12, kind: input, shape index: {}]   ;;  %s5298_s13 = inlined_call_operand.vmem [shape: f32[1,128], index: 13, kind: input, shape index: {}]   ;;  %s5299_s14 = inlined_call_operand.hbm [shape: f32[2,16,128], index: 14, kind: output, shape index: {}]  }
   0x1   :  { %5333 = sst [smem:[#allocation31_spill]] %s5286_s1 }
   0x2   :  { %5334 = sst [smem:[#allocation32_spill]] %s5289_s4 }
   0x3   :  { %5335 = sst [smem:[#allocation33_spill]] %s5290_s5 }
   0x4   :  { %5336 = sst [smem:[#allocation34_spill]] %s5292_s7 }
   0x5   :  { %5337 = sst [smem:[#allocation35_spill]] %s5294_s9 }
   0x6   :  { %5338 = sst [smem:[#allocation36_spill]] %s5295_s10 }
   0x7   :  { %5339 = sst [smem:[#allocation37_spill]] %s5296_s11 }
   0x8   :  { %5340 = sst [smem:[#allocation38_spill]] %s5297_s12 }
   0x9   :  { %5341 = sst [smem:[#allocation39_spill]] %s5298_s13 }
   0xa   :  { %5342 = sst [smem:[#allocation40_spill]] %s5299_s14 }
   0xb   :  { %19 = vsyncpa [#allocation3], 0 }
   0xc   :  { %21 = vsyncpa [#allocation3 + $0x1], 0 }
   0xd   :  { %22 = vsyncpa [#allocation6], 0 }
   0xe   :  { %24 = vsyncpa [#allocation6 + $0x1], 0 }
   0xf   :  { %25 = vsyncpa [#allocation9], 0 }
  0x10   :  { %27 = vsyncpa [#allocation9 + $0x1], 0 }
  0x11   :  { %28 = vsyncpa [#allocation12], 0 }
  0x12   :  { %29 = vsyncpa [#allocation15], 0 }
  0x13   :  { %30 = vsyncpa [#allocation4], 0 }
  0x14   :  { %32 = vsyncpa [#allocation4 + $0x1], 0  ;;  %s4321_s29 = smov 0   ;;  %s4323_s30 = smov 0  }
  0x15   :  { %s4325_s15 = smov 0   ;;  %s4327_s16 = smov 0  }
  0x16 LB: > { %5343 = sst [smem:[#allocation25_spill]] %s4208_s29  ;;  %s4342_s17 = sadd.s32 4294967295, %s4220_s16   ;;  %s4220_s16 = sphi %s4327_s16, %s5421_s16   ;;  %s4216_s15 = sphi %s4325_s15, %s5425_s15   ;;  %s4212_s30 = sphi %s4323_s30, %s5424_s30   ;;  %s4208_s29 = sphi %s4321_s29, %s5423_s29  }
  0x17   : > { %5344 = sst [smem:[#allocation26_spill]] %s4342_s17  ;;  %s2949_s18 = sadd.s32 4294967294, %s4220_s16  }
  0x18   : > { %p58_p0 = scmp.ne.s32.totalorder %s4212_s30, %s4208_s29  ;;  %p5303_p1 = scmp.eq.s32.totalorder %s4342_s17, 0 }
  0x19   : > { %p376_p3 = scmp.eq.s32.totalorder %s2949_s18, 1  ;;  %p2950_p5 = scmp.ge.s32.totalorder %s4220_s16, 1 }
  0x1a   : > { %p4351_p4 = por %p5303_p1, %p58_p0  ;;  %p383_p7 = scmp.lt.s32.totalorder %s4220_s16, 3 }
  0x1b   : > { %p4356_p6 = por %p376_p3, %p58_p0  ;;  %s4222_s22 = smov [#allocation10]  }
  0x1c   : > { %s5345_s19 = scalar_select %p4351_p4, 1, 0 }
  0x1d   : > { %s5346_s20 = scalar_select %p4356_p6, 1, 0 }
  0x1e   : > { %p4361_p8 = pnand %p2950_p5, %p383_p7  ;;  %s395_s23 = sshll.u32 %s4222_s22, 4  ;;  %s4365_s23 = int_to_ptr.vmem [resolvable:$true] %s395_s23 }
  0x1f   : > { %5347 = sst [smem:[#allocation27_spill]] %s5346_s20  ;;  %s4223_s25 = smov [#allocation11]  }
  0x20   : > { %s5348_s21 = scalar_select %p4361_p8, 1, 0 }
  0x21   : > { %p3686_p9 = pneg %p4361_p8  ;;  %s408_s26 = sshll.u32 %s4223_s25, 4  ;;  %s4376_s26 = int_to_ptr.vmem [resolvable:$true] %s408_s26 }
  0x22   : > { %s4224_s27 = smov [#allocation14]   ;;  %s5350_s4 = sld [smem:[#allocation32_spill]] }
  0x23   : > { %p4372_p11 = pnand %p3686_p9, %p5303_p1  ;;  %s4378_s28 = sshll.u32 %s4224_s27, 4  ;;  %s435_s28 = int_to_ptr.vmem [resolvable:$true] %s4378_s28 }
  0x25   : > { %s5349_s24 = scalar_select %p4372_p11, 1, 0 }
  0x26   : > { %p4388_p13 = pneg %p4372_p11 }
  0x28   : > { %s3874_s20 = scalar_lea.hbm %s5350_s4, 2048 }
  0x29   : > { %p3875_p12 = scmp.ne.s32.totalorder %s5350_s4, %s3874_s20  ;;  %p3881_p5 = scmp.lt.u32.totalorder %s3874_s20, %s5350_s4 }
  0x2a   : > { %s5351_s11 = scalar_select %p4388_p13, 1, 0 }
  0x2b   : > { %p3877_p0 = pnand %p4388_p13, %p3875_p12 }
  0x2d   : > { %p3878_p3 = pneg %p3877_p0 }
  0x2f   : > { %p3883_p7 = pnand %p3881_p5, %p3878_p3 }
  0x31   : > { %3886 = shalt.err (!%p3883_p7)
}
  0x32   : > { %s3887_s14 = scalar_lea.vmem %s4365_s23, 2048  ;;  %p3895_p2 = scmp.lt.s32.totalorder %s4365_s23, %s4365_s23 }
  0x33   : > { %p3888_p9 = scmp.ne.s32.totalorder %s4365_s23, %s3887_s14  ;;  %p3896_p6 = scmp.lt.s32.totalorder %s3887_s14, %s3887_s14 }
  0x35   : > { %p3890_p10 = pnand %p3888_p9, %p4388_p13  ;;  %p3897_p12 = por %p3896_p6, %p3895_p2 }
  0x37   : > { %p3891_p1 = pneg %p3890_p10 }
  0x39   : > { %p3898_p0 = pnand %p3897_p12, %p3891_p1 }
  0x3b   : > { %3901 = shalt.err (!%p3898_p0)
}
  0x3c   : > { %s5306_s29 = smov 128   ;;  %s5309_s20 = smov 8  }
  0x3d   : > { %3689 = dma.hbm_to_vmem [thread:$0]  (!%p4372_p11), %s5350_s4, 2048, %s4365_s23, [#allocation9], %s5306_s29, %s5306_s29, %s5309_s20  }
  0x3e   : > { %s5352_s5 = sld [smem:[#allocation33_spill]] }
  0x44   : > { %s3902_s14 = scalar_lea.hbm %s5352_s5, 2048 }
  0x45   : > { %p3903_p1 = scmp.ne.s32.totalorder %s5352_s5, %s3902_s14  ;;  %p3909_p10 = scmp.lt.u32.totalorder %s3902_s14, %s5352_s5 }
  0x47   : > { %p3905_p2 = pnand %p3903_p1, %p4388_p13 }
  0x49   : > { %p3906_p6 = pneg %p3905_p2 }
  0x4b   : > { %p3911_p3 = pnand %p3909_p10, %p3906_p6 }
  0x4d   : > { %3914 = shalt.err (!%p3911_p3)
}
  0x4e   : > { %s3915_s23 = scalar_lea.vmem %s4376_s26, 2048  ;;  %p3923_p12 = scmp.lt.s32.totalorder %s4376_s26, %s4376_s26 }
  0x4f   : > { %p3916_p5 = scmp.ne.s32.totalorder %s4376_s26, %s3915_s23  ;;  %p3924_p0 = scmp.lt.s32.totalorder %s3915_s23, %s3915_s23 }
  0x51   : > { %p3918_p7 = pnand %p3916_p5, %p4388_p13  ;;  %p3925_p1 = por %p3924_p0, %p3923_p12 }
  0x53   : > { %p3919_p9 = pneg %p3918_p7 }
  0x55   : > { %p3926_p2 = pnand %p3925_p1, %p3919_p9 }
  0x57   : > { %3929 = shalt.err (!%p3926_p2)
}
  0x58   : > { %3692 = dma.hbm_to_vmem [thread:$0]  (!%p4372_p11), %s5352_s5, 2048, %s4376_s26, [#allocation12], %s5306_s29, %s5306_s29, %s5309_s20  }
  0x59   : > { %s5353_s7 = sld [smem:[#allocation34_spill]] }
  0x5f   : > { %s3930_s18 = scalar_lea.hbm %s5353_s7, 2048 }
  0x60   : > { %p3931_p6 = scmp.ne.s32.totalorder %s5353_s7, %s3930_s18  ;;  %p3937_p5 = scmp.lt.u32.totalorder %s3930_s18, %s5353_s7 }
  0x62   : > { %p3933_p10 = pnand %p3931_p6, %p4388_p13 }
  0x64   : > { %p3934_p3 = pneg %p3933_p10 }
  0x66   : > { %p3939_p7 = pnand %p3937_p5, %p3934_p3 }
  0x68   : > { %3942 = shalt.err (!%p3939_p7)
}
  0x69   : > { %s3943_s23 = scalar_lea.vmem %s435_s28, 2048  ;;  %p3951_p1 = scmp.lt.s32.totalorder %s435_s28, %s435_s28 }
  0x6a   : > { %p3944_p9 = scmp.ne.s32.totalorder %s435_s28, %s3943_s23  ;;  %p3952_p2 = scmp.lt.s32.totalorder %s3943_s23, %s3943_s23 }
  0x6c   : > { %p3946_p12 = pnand %p3944_p9, %p4388_p13  ;;  %p3953_p4 = por %p3952_p2, %p3951_p1 }
  0x6e   : > { %p3947_p0 = pneg %p3946_p12 }
  0x70   : > { %p3954_p8 = pnand %p3953_p4, %p3947_p0 }
  0x72   : > { %3957 = shalt.err (!%p3954_p8)
}
  0x73   : > { %3698 = dma.hbm_to_vmem [thread:$0]  (!%p4372_p11), %s5353_s7, 2048, %s435_s28, [#allocation15], %s5306_s29, %s5306_s29, %s5309_s20  }
  0x74   : > { %s4461_s10 = sadd.s32 1, %s4220_s16   ;;  %s45_s13 = sadd.s32 1, %s4216_s15 }
  0x75   : > { %5354 = sst [smem:[#allocation28_spill]] %s4461_s10  ;;  %s42_s12 = ssub.s32 %s4220_s16, %s4461_s10 }
  0x76   : > { %p43_p4 = scmp.eq.s32.totalorder %s42_s12, 0  ;;  %p52_p8 = scmp.ne.s32.totalorder %s4216_s15, %s4212_s30 }
  0x77   : > { %p53_p6 = scmp.eq.s32.totalorder %s4220_s16, 0  ;;  %p3724_p10 = scmp.lt.s32.totalorder %s4220_s16, 2 }
  0x78   : > { %s4471_s18 = scalar_select %p43_p4, %s4216_s15, %s45_s13  }
  0x79   : > { %p54_p3 = por %p53_p6, %p52_p8  ;;  %p5356_p5 = scmp.eq.s32.totalorder %s4342_s17, 1 }
  0x7a   : > { %5355 = sst [smem:[#allocation29_spill]] %s4471_s18  ;;  %s5308_s25 = sand.u32 1, %s4216_s15  }
  0x7b   : > { %p4475_p7 = por %p5356_p5, %p52_p8  ;;  %s4481_s28 = sshll.u32 %s4220_s16, 8 }
  0x7c   : > { %s4485_s27 = sshll.u32 %s5308_s25, 4  ;;  %p4487_p9 = pnand %p3724_p10, %p54_p3 }
  0x7d   : > { %s5357_s22 = scalar_select %p4475_p7, 1, 0 }
  0x7e   : > { %s5359_s14 = scalar_select %p4487_p9, 1, 0 }
  0x7f   : > { %5358 = sst [smem:[#allocation30_spill]] %s5357_s22  ;;  %s5311_s23 = sand.u32 1, %s4220_s16  }
  0x80   : > { %s5360_s1 = sld [smem:[#allocation31_spill]]  ;;  %s501_s13 = scalar_lea.vmem [#allocation5], %s4485_s27 }
  0x81   : > { %s508_s29 = sshll.u32 %s501_s13, 4  ;;  %s4503_s25 = scalar_lea.sflag [#allocation6], %s5311_s23  ;;  %s4499_s29 = int_to_ptr.vmem [resolvable:$true] %s508_s29 }
  0x82   : > { %p4509_p0 = pneg %p4487_p9 }
  0x86   : > { %s4496_s12 = scalar_lea.hbm %s5360_s1, %s4481_s28  ;;  %s3963_s13 = scalar_lea.hbm %s5360_s1, 512 }
  0x87   : > { %s3958_s20 = scalar_lea.hbm %s4496_s12, 256  ;;  %p3964_p4 = scmp.lt.u32.totalorder %s4496_s12, %s5360_s1 }
  0x88   : > { %p3959_p12 = scmp.ne.s32.totalorder %s4496_s12, %s3958_s20  ;;  %p3965_p8 = scmp.lt.u32.totalorder %s3963_s13, %s3958_s20 }
  0x89   : > { %p3967_p10 = scmp.lt.u32.totalorder %s3958_s20, %s4496_s12 }
  0x8a   : > { %p3961_p1 = pnand %p4509_p0, %p3959_p12  ;;  %p3966_p6 = por %p3965_p8, %p3964_p4 }
  0x8c   : > { %p3962_p2 = pneg %p3961_p1  ;;  %p3968_p3 = por %p3967_p10, %p3966_p6 }
  0x8e   : > { %p3969_p5 = pnand %p3968_p3, %p3962_p2 }
  0x90   : > { %3972 = shalt.err (!%p3969_p5)
}
  0x91   : > { %s3973_s23 = scalar_lea.vmem %s4499_s29, 256  ;;  %s4227_s26 = smov [#allocation5]  }
  0x92   : > { %p3974_p12 = scmp.ne.s32.totalorder %s4499_s29, %s3973_s23  ;;  %s3978_s9 = sshll.u32 %s4227_s26, 4  ;;  %s3979_s9 = int_to_ptr.vmem [resolvable:$false] %s3978_s9 }
  0x93   : > { %s3980_s5 = scalar_lea.vmem %s3979_s9, 512  ;;  %p3981_p11 = scmp.lt.s32.totalorder %s4499_s29, %s3979_s9 }
  0x94   : > { %p3976_p1 = pnand %p3974_p12, %p4509_p0  ;;  %p3982_p13 = scmp.lt.s32.totalorder %s3980_s5, %s3973_s23 }
  0x96   : > { %p3977_p7 = pneg %p3976_p1  ;;  %p3983_p4 = por %p3982_p13, %p3981_p11 }
  0x98   : > { %p3984_p8 = pnand %p3983_p4, %p3977_p7 }
  0x9a   : > { %3987 = shalt.err (!%p3984_p8)
}
  0x9b   : > { %s5362_s7 = smov 8   ;;  %s5363_s20 = smov 128  }
  0x9c   : > { %3708 = dma.hbm_to_vmem [thread:$0]  (!%p4487_p9), %s4496_s12, 256, %s4499_s29, %s4503_s25, %s5363_s20, %s5363_s20, %s5362_s7  }
  0x9d   : > { %s4228_s13 = smov [#allocation13]   ;;  %s4229_s26 = smov [#allocation16]  }
  0x9e   : > { %s421_s1 = sshll.u32 %s4228_s13, 4  ;;  %s447_s18 = sshll.u32 %s4229_s26, 4  ;;  %s422_s1 = int_to_ptr.vmem [resolvable:$true] %s421_s1  ;;  %s4536_s18 = int_to_ptr.vmem [resolvable:$true] %s447_s18 }
  0x9f   : > { %s3988_s5 = scalar_lea.hbm %s5291_s6, 2048  ;;  %p5364_p13 = scmp.ne.s32.totalorder %s5351_s11, 0 }
  0xa0   : > { %p3989_p11 = scmp.ne.s32.totalorder %s5291_s6, %s3988_s5  ;;  %p3995_p6 = scmp.lt.u32.totalorder %s3988_s5, %s5291_s6 }
  0xa2   : > { %p3991_p7 = pnand %p3989_p11, %p5364_p13 }
  0xa4   : > { %p3992_p2 = pneg %p3991_p7 }
  0xa6   : > { %p3997_p10 = pnand %p3995_p6, %p3992_p2 }
  0xa8   : > { %4000 = shalt.err (!%p3997_p10)
}
  0xa9   : > { %s4001_s12 = scalar_lea.vmem %s422_s1, 2048  ;;  %p4009_p1 = scmp.lt.s32.totalorder %s422_s1, %s422_s1 }
  0xaa   : > { %p4002_p3 = scmp.ne.s32.totalorder %s422_s1, %s4001_s12  ;;  %p4010_p4 = scmp.lt.s32.totalorder %s4001_s12, %s4001_s12 }
  0xac   : > { %p4004_p5 = pnand %p4002_p3, %p5364_p13  ;;  %p4011_p8 = por %p4010_p4, %p4009_p1 }
  0xae   : > { %p4005_p12 = pneg %p4004_p5 }
  0xb0   : > { %p4012_p9 = pnand %p4011_p8, %p4005_p12 }
  0xb2   : > { %4015 = shalt.err (!%p4012_p9)
}
  0xb3   : > { %p5365_p11 = scmp.ne.s32.totalorder %s5349_s24, 0  ;;  %s4016_s26 = scalar_lea.hbm %s5293_s8, 2048 }
  0xb4   : > { %p4017_p7 = scmp.ne.s32.totalorder %s5293_s8, %s4016_s26  ;;  %p4023_p6 = scmp.lt.u32.totalorder %s4016_s26, %s5293_s8 }
  0xb5   : > { %3695 = dma.hbm_to_vmem [thread:$0]  (!%p5365_p11), %s5291_s6, 2048, %s422_s1, [#allocation12], %s5363_s20, %s5363_s20, %s5362_s7  }
  0xb6   : > { %p4019_p9 = pnand %p4017_p7, %p5364_p13 }
  0xb8   : > { %p4020_p2 = pneg %p4019_p9 }
  0xba   : > { %p4025_p10 = pnand %p4023_p6, %p4020_p2 }
  0xbc   : > { %4028 = shalt.err (!%p4025_p10)
}
  0xbd   : > { %s4029_s1 = scalar_lea.vmem %s4536_s18, 2048  ;;  %p4037_p1 = scmp.lt.s32.totalorder %s4536_s18, %s4536_s18 }
  0xbe   : > { %p4030_p3 = scmp.ne.s32.totalorder %s4536_s18, %s4029_s1  ;;  %p4038_p4 = scmp.lt.s32.totalorder %s4029_s1, %s4029_s1 }
  0xc0   : > { %p4032_p5 = pnand %p4030_p3, %p5364_p13  ;;  %p4039_p8 = por %p4038_p4, %p4037_p1 }
  0xc2   : > { %p4033_p12 = pneg %p4032_p5 }
  0xc4   : > { %p4040_p7 = pnand %p4039_p8, %p4033_p12 }
  0xc6   : > { %4043 = shalt.err (!%p4040_p7)
}
  0xc7   : > { %3701 = dma.hbm_to_vmem [thread:$0]  (!%p5365_p11), %s5293_s8, 2048, %s4536_s18, [#allocation15], %s5363_s20, %s5363_s20, %s5362_s7  }
  0xc8   : > { %s4589_s22 = scalar_lea.hbm %s5285_s0, %s4481_s28  ;;  %s480_s24 = scalar_lea.vmem [#allocation2], %s4485_s27 }
  0xc9   : > { %s487_s13 = sshll.u32 %s480_s24, 4  ;;  %s5366_s26 = sand.u32 1, %s4216_s15   ;;  %s4592_s13 = int_to_ptr.vmem [resolvable:$true] %s487_s13 }
  0xca   : > { %s4596_s23 = scalar_lea.sflag [#allocation3], %s5366_s26  ;;  %s4044_s9 = scalar_lea.hbm %s4589_s22, 256 }
  0xcb   : > { %p4045_p13 = scmp.ne.s32.totalorder %s4589_s22, %s4044_s9  ;;  %s4049_s29 = scalar_lea.hbm %s5285_s0, 512 }
  0xcc   : > { %p4050_p2 = scmp.lt.u32.totalorder %s4589_s22, %s5285_s0  ;;  %p4051_p6 = scmp.lt.u32.totalorder %s4049_s29, %s4044_s9 }
  0xcd   : > { %p4047_p11 = pnand %p4045_p13, %p4509_p0  ;;  %p4053_p3 = scmp.lt.u32.totalorder %s4044_s9, %s4589_s22 }
  0xce   : > { %p4052_p10 = por %p4051_p6, %p4050_p2 }
  0xcf   : > { %p4048_p9 = pneg %p4047_p11 }
  0xd0   : > { %p4054_p5 = por %p4053_p3, %p4052_p10 }
  0xd2   : > { %p4055_p12 = pnand %p4054_p5, %p4048_p9 }
  0xd4   : > { %4058 = shalt.err (!%p4055_p12)
}
  0xd5   : > { %s4059_s17 = scalar_lea.vmem %s4592_s13, 256  ;;  %s4230_s11 = smov [#allocation2]  }
  0xd6   : > { %p4060_p1 = scmp.ne.s32.totalorder %s4592_s13, %s4059_s17  ;;  %s4064_s10 = sshll.u32 %s4230_s11, 4  ;;  %s4065_s10 = int_to_ptr.vmem [resolvable:$false] %s4064_s10 }
  0xd7   : > { %s4066_s24 = scalar_lea.vmem %s4065_s10, 512  ;;  %p4067_p7 = scmp.lt.s32.totalorder %s4592_s13, %s4065_s10 }
  0xd8   : > { %p4062_p4 = pnand %p4060_p1, %p4509_p0  ;;  %p4068_p13 = scmp.lt.s32.totalorder %s4066_s24, %s4059_s17 }
  0xda   : > { %p4063_p8 = pneg %p4062_p4  ;;  %p4069_p11 = por %p4068_p13, %p4067_p7 }
  0xdc   : > { %p4070_p2 = pnand %p4069_p11, %p4063_p8 }
  0xde   : > { %4073 = shalt.err (!%p4070_p2)
}
  0xdf   : > { %p5367_p9 = scmp.ne.s32.totalorder %s5359_s14, 0  ;;  %s4627_s18 = scalar_lea.hbm %s5287_s2, %s4481_s28 }
  0xe0   : > { %s522_s5 = scalar_lea.vmem [#allocation7], %s4485_s27  ;;  %s4074_s1 = scalar_lea.hbm %s4627_s18, 256 }
  0xe1   : > { %3705 = dma.hbm_to_vmem [thread:$0]  (!%p5367_p9), %s4589_s22, 256, %s4592_s13, %s4596_s23, %s5363_s20, %s5363_s20, %s5362_s7  }
  0xe2   : > { %s529_s29 = sshll.u32 %s522_s5, 4  ;;  %p4075_p6 = scmp.ne.s32.totalorder %s4627_s18, %s4074_s1  ;;  %s4630_s29 = int_to_ptr.vmem [resolvable:$true] %s529_s29 }
  0xe3   : > { %s4079_s13 = scalar_lea.hbm %s5287_s2, 512  ;;  %p4080_p5 = scmp.lt.u32.totalorder %s4627_s18, %s5287_s2 }
  0xe4   : > { %p4077_p10 = pnand %p4075_p6, %p4509_p0  ;;  %p4081_p12 = scmp.lt.u32.totalorder %s4079_s13, %s4074_s1 }
  0xe5   : > { %p4083_p4 = scmp.lt.u32.totalorder %s4074_s1, %s4627_s18 }
  0xe6   : > { %p4078_p3 = pneg %p4077_p10  ;;  %p4082_p1 = por %p4081_p12, %p4080_p5 }
  0xe8   : > { %p4084_p8 = por %p4083_p4, %p4082_p1 }
  0xea   : > { %p4085_p7 = pnand %p4084_p8, %p4078_p3 }
  0xec   : > { %4088 = shalt.err (!%p4085_p7)
}
  0xed   : > { %s4089_s11 = scalar_lea.vmem %s4630_s29, 256  ;;  %s4231_s10 = smov [#allocation7]  }
  0xee   : > { %p4090_p13 = scmp.ne.s32.totalorder %s4630_s29, %s4089_s11  ;;  %s4094_s24 = sshll.u32 %s4231_s10, 4  ;;  %s4095_s24 = int_to_ptr.vmem [resolvable:$false] %s4094_s24 }
  0xef   : > { %s4096_s26 = scalar_lea.vmem %s4095_s24, 512  ;;  %p4097_p6 = scmp.lt.s32.totalorder %s4630_s29, %s4095_s24 }
  0xf0   : > { %p4092_p11 = pnand %p4090_p13, %p4509_p0  ;;  %p4098_p10 = scmp.lt.s32.totalorder %s4096_s26, %s4089_s11 }
  0xf2   : > { %p4093_p2 = pneg %p4092_p11  ;;  %p4099_p5 = por %p4098_p10, %p4097_p6 }
  0xf4   : > { %p4100_p12 = pnand %p4099_p5, %p4093_p2 }
  0xf6   : > { %4103 = shalt.err (!%p4100_p12)
}
  0xf7   : > { %3711 = dma.hbm_to_vmem [thread:$0]  (!%p5367_p9), %s4627_s18, 256, %s4630_s29, %s4503_s25, %s5363_s20, %s5363_s20, %s5362_s7  }
  0xf8   : > { %s4661_s1 = scalar_lea.hbm %s5288_s3, %s4481_s28  ;;  %s543_s12 = scalar_lea.vmem [#allocation8], %s4485_s27 }
  0xf9   : > { %s550_s22 = sshll.u32 %s543_s12, 4  ;;  %s5368_s13 = sand.u32 1, %s4220_s16   ;;  %s4664_s22 = int_to_ptr.vmem [resolvable:$true] %s550_s22 }
  0xfa   : > { %s4668_s23 = scalar_lea.sflag [#allocation9], %s5368_s13  ;;  %s4104_s17 = scalar_lea.hbm %s4661_s1, 256 }
  0xfb   : > { %p4105_p3 = scmp.ne.s32.totalorder %s4661_s1, %s4104_s17  ;;  %s4109_s28 = scalar_lea.hbm %s5288_s3, 512 }
  0xfc   : > { %p4110_p8 = scmp.lt.u32.totalorder %s4661_s1, %s5288_s3  ;;  %p4111_p7 = scmp.lt.u32.totalorder %s4109_s28, %s4104_s17 }
  0xfd   : > { %p4107_p1 = pnand %p4105_p3, %p4509_p0  ;;  %p4113_p11 = scmp.lt.u32.totalorder %s4104_s17, %s4661_s1 }
  0xfe   : > { %p4112_p13 = por %p4111_p7, %p4110_p8 }
  0xff   : > { %p4108_p4 = pneg %p4107_p1 }
 0x100   : > { %p4114_p2 = por %p4113_p11, %p4112_p13 }
 0x102   : > { %p4115_p6 = pnand %p4114_p2, %p4108_p4 }
 0x104   : > { %4118 = shalt.err (!%p4115_p6)
}
 0x105   : > { %s4119_s27 = scalar_lea.vmem %s4664_s22, 256  ;;  %s4232_s10 = smov [#allocation8]  }
 0x106   : > { %p4120_p10 = scmp.ne.s32.totalorder %s4664_s22, %s4119_s27  ;;  %s4124_s24 = sshll.u32 %s4232_s10, 4  ;;  %s4125_s24 = int_to_ptr.vmem [resolvable:$false] %s4124_s24 }
 0x107   : > { %s4126_s26 = scalar_lea.vmem %s4125_s24, 512  ;;  %p4127_p3 = scmp.lt.s32.totalorder %s4664_s22, %s4125_s24 }
 0x108   : > { %p4122_p5 = pnand %p4120_p10, %p4509_p0  ;;  %p4128_p1 = scmp.lt.s32.totalorder %s4126_s26, %s4119_s27 }
 0x10a   : > { %p4123_p12 = pneg %p4122_p5  ;;  %p4129_p8 = por %p4128_p1, %p4127_p3 }
 0x10c   : > { %p4130_p7 = pnand %p4129_p8, %p4123_p12 }
 0x10e   : > { %4133 = shalt.err (!%p4130_p7)
}
 0x10f   : > { %3714 = dma.hbm_to_vmem [thread:$0]  (!%p5367_p9), %s4661_s1, 256, %s4664_s22, %s4668_s23, %s5363_s20, %s5363_s20, %s5362_s7  }
 0x110   : > { %p5369_p0 = scmp.ne.s32.totalorder %s5348_s21, 0 }
 0x111   : > { %s4698_s4 = sand.u32 (!%p5369_p0), 1, %s4212_s30   ;;  %p5370_p4 = scmp.ne.s32.totalorder (!%p5369_p0), %s5345_s19, 0 }
 0x112   : > { %562 = sbr.rel (%p5369_p0) target bundleno = 4018 (0xfb2), region = 76  ;;  %s4701_s9 = sshll.u32 (!%p5369_p0), %s4698_s4, 4 }
 0x113   : > { %s565_s14 = scalar_lea.sflag (!%p5369_p0), [#allocation3], %s4698_s4  ;;  %s568_s5 = scalar_lea.vmem (!%p5369_p0), [#allocation2], %s4701_s9 }
 0x119   : > { %4179 = dma.done.wait (%p5370_p4), %s565_s14, 256  }
 0x11a   : > { %4181 = vsyncadd (%p5370_p4), %s565_s14, 4294967040  ;;  %s5371_s7 = sld [smem:[#allocation26_spill]]  ;;  %s577_s1 = scalar_lea.vmem [#allocation5], %s4701_s9 }
 0x120   : > { %s573_s21 = sand.u32 1, %s5371_s7  }
 0x121   : > { %s574_s20 = scalar_lea.sflag [#allocation6], %s573_s21 }
 0x122   : > { %4183 = dma.done.wait (%p5370_p4), %s574_s20, 512  }
 0x123   : > { %4185 = vsyncadd (%p5370_p4), %s574_s20, 4294966784  ;;  %s586_s12 = scalar_lea.vmem [#allocation7], %s4701_s9  ;;  %s592_s22 = scalar_lea.sflag [#allocation9], %s573_s21 }
 0x124   : > { %s595_s13 = scalar_lea.vmem [#allocation8], %s4701_s9 }
 0x125   : > { %4187 = dma.done.wait (%p5370_p4), %s592_s22, 256  }
 0x126   : > { %4189 = vsyncadd (%p5370_p4), %s592_s22, 4294967040  ;;  %p5372_p9 = scmp.eq.s32.totalorder %s5371_s7, 0 }
 0x128   : > { %4191 = dma.done.wait (%p5372_p9), [#allocation9], 2048   ;;  %p5373_p13 = pmov %p5372_p9 }
 0x129   : > { %p5374_p11 = pmov %p5372_p9 }
 0x12a   : > { %4193 = vsyncadd (%p5373_p13), [#allocation9], 4294965248 }
 0x12b   : > { %4195 = dma.done.wait (%p5374_p11), [#allocation12], 4096   ;;  %p5375_p2 = pmov %p5372_p9 }
 0x12d   : > { %4197 = vsyncadd (%p5375_p2), [#allocation12], 4294963200  ;;  %p5376_p6 = pmov %p5375_p2 }
 0x12e   : > { %p5377_p10 = pmov %p5375_p2 }
 0x12f   : > { %4199 = dma.done.wait (%p5376_p6), [#allocation15], 4096  }
 0x130   : > { %4201 = vsyncadd (%p5377_p10), [#allocation15], 4294963200  ;;  %v779_v0 = vld [vmem:[#allocation11] sm:$0xff]  ;;  %v780_v1 = vld [vmem:[#allocation11 + $0x8] sm:$0xff]  ;;  %s5378_s17 = sld [smem:[#allocation36_spill]]  ;;  %s5379_s28 = sld [smem:[#allocation35_spill]] }
 0x131   : > { %v781_v2 = vld [vmem:[#allocation11 + $0x10] sm:$0xff]  ;;  %v3464_v3 = vpack.c.bf16 %v780_v1, %v779_v0  ;;  %v782_v4 = vld [vmem:[#allocation11 + $0x18] sm:$0xff]  ;;  %v783_v6 = vld [vmem:[#allocation11 + $0x20] sm:$0xff]  ;;  %s5380_s27 = sld [smem:[#allocation39_spill]]  ;;  %vm1125_vm0 = vcmask 261120   ;;  %s4233_s10 = smov 96  }
 0x132   : > { %v3468_v5 = vpack.c.bf16 %v782_v4, %v781_v2  ;;  %v784_v7 = vld [vmem:[#allocation11 + $0x28] sm:$0xff]  ;;  %v777_v9 = vld [vmem:[%s577_s1] sm:$0xff]  ;;  %v786_v11 = vld [vmem:[#allocation11 + $0x38] sm:$0xff]  ;;  %s5383_s14 = sld [smem:[#allocation38_spill]]  ;;  %s4235_s21 = smov 1   ;;  %vm1227_vm3 = vcmask 7168  }
 0x133   : > { %3465 = vmatprep.subr.bf16.mxu1 %v3464_v3  ;;  %v3472_v8 = vpack.c.bf16 %v784_v7, %v783_v6  ;;  %v785_v10 = vld [vmem:[#allocation11 + $0x30] sm:$0xff]  ;;  %3240 = vmatprep.mubr.f32.mxu1 %v777_v9  ;;  %v677_v12 = vld [vmem:[#allocation10] sm:$0xff]  ;;  %v678_v13 = vld [vmem:[#allocation10 + $0x8] sm:$0xff]  ;;  %s4236_s20 = smov 114   ;;  %vm1246_vm6 = vcmask 15360   ;;  %s4238_s22 = smov 116  }
 0x134   : > { %3467 = vmatpush3.bf16.msra.mxu1 %v3464_v3  ;;  %v3432_v14 = vpack.c.bf16 %v678_v13, %v677_v12  ;;  %v679_v15 = vld [vmem:[#allocation10 + $0x10] sm:$0xff]  ;;  %v680_v16 = vld [vmem:[#allocation10 + $0x18] sm:$0xff]  ;;  %v3476_v17 = vpack.c.bf16 %v786_v11, %v785_v10  ;;  %v681_v19 = vld [vmem:[#allocation10 + $0x20] sm:$0xff]  ;;  %vm5331_vm9 = vcmask 31744   ;;  %s4241_s19 = smov 8   ;;  %vm5327_vm12 = vcmask 64512  }
 0x135   : > { %3469 = vmatprep.subr.bf16.mxu1 %v3468_v5  ;;  %v3436_v18 = vpack.c.bf16 %v680_v16, %v679_v15  ;;  %v682_v20 = vld [vmem:[#allocation10 + $0x28] sm:$0xff]  ;;  %v787_v21 = vld [vmem:[#allocation11 + $0x40] sm:$0xff]  ;;  %v683_v25 = vld [vmem:[#allocation10 + $0x30] sm:$0xff]  ;;  %vm1291_vm15 = vcmask 1046528   ;;  %s5388_s25 = sld [smem:[#allocation37_spill]]  ;;  %s4242_s18 = smov 64  }
 0x136   : > { %v788_v22 = vld [vmem:[#allocation11 + $0x48] sm:$0xff]  ;;  %3433 = vmatprep.subr.bf16.mxu0 %v3432_v14  ;;  %v3440_v23 = vpack.c.bf16 %v682_v20, %v681_v19  ;;  %v684_v26 = vld [vmem:[#allocation10 + $0x38] sm:$0xff]  ;;  %v789_v27 = vld [vmem:[#allocation11 + $0x50] sm:$0xff]  ;;  %s5414_s29 = sld [smem:[#allocation30_spill]]  ;;  %s674_s11 = scalar_lea.vmem [#allocation17], %s4701_s9 }
 0x137   : > { %3435 = vmatpush3.bf16.msra.mxu0 %v3432_v14  ;;  %v3480_v24 = vpack.c.bf16 %v788_v22, %v787_v21  ;;  %v790_v28 = vld [vmem:[#allocation11 + $0x58] sm:$0xff]  ;;  %v3444_v29 = vpack.c.bf16 %v684_v26, %v683_v25  ;;  %v685_v31 = vld [vmem:[#allocation10 + $0x40] sm:$0xff]  ;;  %v686_v32 = vld [vmem:[#allocation10 + $0x48] sm:$0xff]  ;;  %s4244_s9 = smov [#allocation17]  }
 0x138   : > { %3471 = vmatpush3.bf16.msra.mxu1 %v3468_v5  ;;  %3437 = vmatprep.subr.bf16.mxu0 %v3436_v18  ;;  %v3484_v30 = vpack.c.bf16 %v790_v28, %v789_v27  ;;  %v675_v33 = vld [vmem:[%s568_s5] sm:$0xff]  ;;  %v792_v35 = vld [vmem:[#allocation11 + $0x68] sm:$0xff]  ;;  %v3448_v36 = vpack.c.bf16 %v686_v32, %v685_v31  ;;  %v688_v39 = vld [vmem:[#allocation10 + $0x58] sm:$0xff] }
 0x139   : > { %3473 = vmatprep.subr.bf16.mxu1 %v3472_v8  ;;  %v791_v34 = vld [vmem:[#allocation11 + $0x60] sm:$0xff]  ;;  %3205 = vmatprep.mubr.f32.mxu0 %v675_v33  ;;  %v687_v38 = vld [vmem:[#allocation10 + $0x50] sm:$0xff]  ;;  %v794_v41 = vld [vmem:[#allocation11 + $0x78] sm:$0xff] }
 0x13a   : > { %v3488_v37 = vpack.c.bf16 %v792_v35, %v791_v34  ;;  %v793_v40 = vld [vmem:[#allocation11 + $0x70] sm:$0xff]  ;;  %v3452_v42 = vpack.c.bf16 %v688_v39, %v687_v38  ;;  %v689_v44 = vld [vmem:[#allocation10 + $0x60] sm:$0xff]  ;;  %v690_v45 = vld [vmem:[#allocation10 + $0x68] sm:$0xff] }
 0x13b   : > { %3439 = vmatpush3.bf16.msra.mxu0 %v3436_v18  ;;  %v3492_v43 = vpack.c.bf16 %v794_v41, %v793_v40  ;;  %v979_v46 = vld [vmem:[#allocation14] sm:$0xff]  ;;  %v980_v47 = vld [vmem:[#allocation14 + $0x8] sm:$0xff]  ;;  %v3456_v48 = vpack.c.bf16 %v690_v45, %v689_v44  ;;  %v691_v50 = vld [vmem:[#allocation10 + $0x70] sm:$0xff] }
 0x13c   : > { %3475 = vmatpush3.bf16.msra.mxu1 %v3472_v8  ;;  %3441 = vmatprep.subr.bf16.mxu0 %v3440_v23  ;;  %v3528_v49 = vpack.c.bf16 %v980_v47, %v979_v46  ;;  %v692_v51 = vld [vmem:[#allocation10 + $0x78] sm:$0xff]  ;;  %v981_v52 = vld [vmem:[#allocation14 + $0x10] sm:$0xff]  ;;  %v983_v57 = vld [vmem:[#allocation14 + $0x20] sm:$0xff]  ;;  %p5416_p12 = scmp.ne.s32.totalorder %s5414_s29, 0 }
 0x13d   : > { %3477 = vmatprep.subr.bf16.mxu1 %v3476_v17  ;;  %v982_v53 = vld [vmem:[#allocation14 + $0x18] sm:$0xff]  ;;  %v3460_v55 = vpack.c.bf16 %v692_v51, %v691_v50  ;;  %v984_v58 = vld [vmem:[#allocation14 + $0x28] sm:$0xff]  ;;  %v977_v59 = vld [vmem:[%s595_s13] sm:$0xff] }
 0x13e   : > { %v778_v54 = vld [vmem:[%s577_s1 + $0x8] sm:$0xff]  ;;  %v3532_v56 = vpack.c.bf16 %v982_v53, %v981_v52  ;;  %v3536_v60 = vpack.c.bf16 %v984_v58, %v983_v57  ;;  %v985_v61 = vld [vmem:[#allocation14 + $0x30] sm:$0xff]  ;;  %v987_v1 = vld [vmem:[#allocation14 + $0x40] sm:$0xff]  ;;  %s4237_s1 = smov 2  }
 0x13f   : > { %3443 = vmatpush3.bf16.msra.mxu0 %v3440_v23  ;;  %v986_v62 = vld [vmem:[#allocation14 + $0x38] sm:$0xff]  ;;  %v988_v2 = vld [vmem:[#allocation14 + $0x48] sm:$0xff]  ;;  %v989_v4 = vld [vmem:[#allocation14 + $0x50] sm:$0xff] }
 0x140   : > { %3479 = vmatpush3.bf16.msra.mxu1 %v3476_v17  ;;  %3445 = vmatprep.subr.bf16.mxu0 %v3444_v29  ;;  %v676_v63 = vld [vmem:[%s568_s5 + $0x8] sm:$0xff]  ;;  %v3540_v0 = vpack.c.bf16 %v986_v62, %v985_v61  ;;  %v3544_v3 = vpack.c.bf16 %v988_v2, %v987_v1  ;;  %v991_v7 = vld [vmem:[#allocation14 + $0x60] sm:$0xff]  ;;  %v993_v10 = vld [vmem:[#allocation14 + $0x70] sm:$0xff]  ;;  %s4234_s5 = smov 113  }
 0x141   : > { %3481 = vmatprep.subr.bf16.mxu1 %v3480_v24  ;;  %v990_v5 = vld [vmem:[#allocation14 + $0x58] sm:$0xff]  ;;  %v992_v8 = vld [vmem:[#allocation14 + $0x68] sm:$0xff]  ;;  %v2981_v14 = vld [vmem:[%s5378_s17] ss:$0 sm:$0xff] }
 0x142   : > { %v3548_v6 = vpack.c.bf16 %v990_v5, %v989_v4  ;;  %v3552_v9 = vpack.c.bf16 %v992_v8, %v991_v7  ;;  %v994_v11 = vld [vmem:[#allocation14 + $0x78] sm:$0xff]  ;;  %v2980_v21 = vld [vmem:[%s5379_s28] ss:$0 sm:$0xff]  ;;  %vm4766_vm1 = vmpackc.low %vm1125_vm0, %vm1125_vm0  ;;  %s4243_s28 = smov 32  }
 0x143   : > { %3447 = vmatpush3.bf16.msra.mxu0 %v3444_v29  ;;  %v3556_v12 = vpack.c.bf16 %v994_v11, %v993_v10  ;;  %v978_v13 = vld [vmem:[%s595_s13 + $0x8] sm:$0xff]  ;;  %v2984_v25 = vld [vmem:[%s5380_s27] ss:$0 sm:$0xff]  ;;  %s4239_s13 = smov 4   ;;  %s2763_s27 = sshll.u32 %s674_s11, 4  ;;  %s5235_s27 = int_to_ptr.vmem [resolvable:$true] %s2763_s27 }
 0x144   : > { %3483 = vmatpush3.bf16.msra.mxu1 %v3480_v24  ;;  %3449 = vmatprep.subr.bf16.mxu0 %v3448_v36 }
 0x145   : > { %3485 = vmatprep.subr.bf16.mxu1 %v3484_v30 }
 0x147   : > { %3451 = vmatpush3.bf16.msra.mxu0 %v3448_v36  ;;  %v2983_v36 = vld [vmem:[%s5383_s14] ss:$0 sm:$0xff]  ;;  %s5415_s14 = sld [smem:[#allocation40_spill]] }
 0x148   : > { %3487 = vmatpush3.bf16.msra.mxu1 %v3484_v30  ;;  %3453 = vmatprep.subr.bf16.mxu0 %v3452_v42 }
 0x149   : > { %3489 = vmatprep.subr.bf16.mxu1 %v3488_v37 }
 0x14b   : > { %3455 = vmatpush3.bf16.msra.mxu0 %v3452_v42 }
 0x14c   : > { %3491 = vmatpush3.bf16.msra.mxu1 %v3488_v37  ;;  %3457 = vmatprep.subr.bf16.mxu0 %v3456_v48 }
 0x14d   : > { %3493 = vmatprep.subr.bf16.mxu1 %v3492_v43 }
 0x14f   : > { %3459 = vmatpush3.bf16.msra.mxu0 %v3456_v48 }
 0x150   : > { %3495 = vmatpush3.bf16.msra.mxu1 %v3492_v43  ;;  %3461 = vmatprep.subr.bf16.mxu0 %v3460_v55 }
 0x151   : > { %3529 = vmatprep.subr.bf16.mxu1 %v3528_v49 }
 0x153   : > { %3241 = vmatmul.mubr.f32.vlgmr.msra.gmra.mrb[0].mxu1 %v778_v54  ;;  %3463 = vmatpush3.bf16.msra.mxu0 %v3460_v55 }
 0x154   : > { %3531 = vmatpush3.bf16.msra.mxu1 %v3528_v49  ;;  %3310 = vmatprep.mubr.f32.mxu1 %v977_v59  ;;  %v1088_v49 = vlaneseq }
 0x155   : > { %3533 = vmatprep.subr.bf16.mxu1 %v3532_v56 }
 0x156   : > { %3206 = vmatmul.mubr.f32.vlgmr.msra.gmra.mrb[0].mxu0 %v676_v63  ;;  %v4812_v50 = vshrl.u32 %v1088_v49, 7 }
 0x158   : > { %3535 = vmatpush3.bf16.msra.mxu1 %v3532_v56  ;;  %v4815_v51 = vadd.s32 8, %v4812_v50  ;;  %v4825_v54 = vadd.s32 1, %v4812_v50 }
 0x159   : > { %3537 = vmatprep.subr.bf16.mxu1 %v3536_v60 }
 0x15a   : > { %v4818_v52 = vadd.s32 1, %v4815_v51  ;;  %v1099_v57 = vand.u32 1, %v4825_v54 }
 0x15c   : > { %3539 = vmatpush3.bf16.msra.mxu1 %v3536_v60  ;;  %vm1096_vm2 = vcmp.eq.s32.totalorder %v4818_v52, 16  ;;  %vm4835_vm5 = vcmp.eq.s32.totalorder %v1099_v57, 1  ;;  %v878_v57 = vld [vmem:[%s586_s12 + $0x8] sm:$0xff] }
 0x15d   : > { %3541 = vmatprep.subr.bf16.mxu1 %v3540_v0  ;;  %v4822_v53 = vsel %vm1096_vm2, 0, %v4818_v52 }
 0x15e   : > { %v1100_v55 = vand.u32 1, %v4822_v53  ;;  %v1104_v5 = vshra.s32 %v4822_v53, 1 }
 0x160   : > { %3543 = vmatpush3.bf16.msra.mxu1 %v3540_v0  ;;  %vm4829_vm4 = vcmp.eq.s32.totalorder %v1100_v55, 1  ;;  %v4853_v7 = vand.u32 1, %v1104_v5  ;;  %v894_v55 = vld [vmem:[#allocation13 + $0x78] sm:$0xff] }
 0x161   : > { %3545 = vmatprep.subr.bf16.mxu1 %v3544_v3 }
 0x162   : > { %vm5329_vm7 = vcmp.eq.s32.totalorder %v4853_v7, 1 }
 0x164   : > { %3547 = vmatpush3.bf16.msra.mxu1 %v3544_v3 }
 0x165   : > { %3549 = vmatprep.subr.bf16.mxu1 %v3548_v6 }
 0x168   : > { %3551 = vmatpush3.bf16.msra.mxu1 %v3548_v6  ;;  %v1103_v6 = vshra.s32 %v4825_v54, 1 }
 0x169   : > { %3553 = vmatprep.subr.bf16.mxu1 %v3552_v9 }
 0x16c   : > { %3555 = vmatpush3.bf16.msra.mxu1 %v3552_v9  ;;  %v4855_v9 = vand.u32 1, %v1103_v6 }
 0x16d   : > { %3557 = vmatprep.subr.bf16.mxu1 %v3556_v12 }
 0x16e   : > { %vm5332_vm8 = vcmp.eq.s32.totalorder %v4855_v9, 1 }
 0x170   : > { %3559 = vmatpush3.bf16.msra.mxu1 %v3556_v12 }
 0x173   : > { %3311 = vmatmul.mubr.f32.vlgmr.msra.gmra.mrb[2].mxu1 %v978_v13 }
 0x226   : > { %v3242_v15 = vpop.f32.mrb[0].mxu1 }
 0x227   : > { %v874_v16 = vadd.f32 %v3242_v15, %v2981_v14  ;;  %v868_v17 = vpop.f32.mrb[1].mxu1 }
 0x228   : > { %v869_v18 = vadd.f32 %v2981_v14, %v868_v17  ;;  %v879_v17 = vld [vmem:[#allocation13] sm:$0xff] }
 0x229   : > { %v3207_v22 = vpop.f32.mrb[0].mxu0 }
 0x22a   : > { %v3566_v19 = vpack.c.bf16 %v874_v16, %v869_v18  ;;  %v4748_v20 = vpack.i.bf16 %v874_v16, %v869_v18  ;;  %v772_v23 = vadd.f32 %v3207_v22, %v2980_v21  ;;  %v766_v24 = vpop.f32.mrb[1].mxu0  ;;  %v880_v18 = vld [vmem:[#allocation13 + $0x8] sm:$0xff]  ;;  %v882_v22 = vld [vmem:[#allocation13 + $0x18] sm:$0xff] }
 0x22b   : > { %v767_v26 = vadd.f32 %v2980_v21, %v766_v24  ;;  %v3496_v21 = vpack.c.bf16 %v880_v18, %v879_v17  ;;  %v883_v24 = vld [vmem:[#allocation13 + $0x20] sm:$0xff] }
 0x22c   : > { %v776_v27 = vmul.f32 0.088388346, %v772_v23 }
 0x22d   : > { %v775_v28 = vmul.f32 0.088388346, %v767_v26  ;;  %3497 = vmatprep.subr.bf16.mxu0 %v3496_v21 }
 0x22e   : > { %v4756_v29 = vadd.f32 %v2984_v25, %v776_v27  ;;  %v4793_v38 = vadd.f32 %v2983_v36, %v776_v27  ;;  %3499 = vmatpush3.bf16.msra.mxu0 %v3496_v21  ;;  %v877_v27 = vld [vmem:[%s586_s12] sm:$0xff]  ;;  %s4240_s12 = smov 120  }
 0x22f   : > { %v4758_v30 = vadd.f32 %v2984_v25, %v775_v28  ;;  %v4785_v37 = vadd.f32 %v2983_v36, %v775_v28  ;;  %v884_v25 = vld [vmem:[#allocation13 + $0x28] sm:$0xff]  ;;  %v885_v28 = vld [vmem:[#allocation13 + $0x30] sm:$0xff]  ;;  %3275 = vmatprep.mubr.f32.mxu0 %v877_v27 }
 0x230   : > { %1496 = vrot.lane.b32.xlu1 %v4756_v29, %s4233_s10  ;;  %v3504_v26 = vpack.c.bf16 %v884_v25, %v883_v24  ;;  %v888_v36 = vld [vmem:[#allocation13 + $0x48] sm:$0xff] }
 0x231   : > { %3317 = vmatprep.mubr.msk.f32.mxu1 %vm1125_vm0, %v4758_v30 }
 0x246   : > { %v3312_v31 = vpop.f32.mrb[2].mxu1 }
 0x247   : > { %v1061_v32 = vpop.f32.mrb[3].mxu1 }
 0x248   : > { %v3560_v34 = vpack.c.bf16 %v3312_v31, %v1061_v32  ;;  %v4770_v35 = vpack.i.bf16 %v3312_v31, %v1061_v32  ;;  %v886_v31 = vld [vmem:[#allocation13 + $0x38] sm:$0xff] }
 0x249   : > { %v3508_v32 = vpack.c.bf16 %v886_v31, %v885_v28 }
 0x24a   : > { %3783 = vrot.lane.b32.xlu0 %v4770_v35, %s4233_s10  ;;  %3562 = vmatprep.subr.msk.bf16.mxu1 %vm4766_vm1, %v3560_v34 }
 0x24b   : > { %3565 = vmatpush3.bf16.xpose.msk.msra.mxu1 %vm4766_vm1, %v3560_v34  ;;  %v887_v34 = vld [vmem:[#allocation13 + $0x40] sm:$0xff] }
 0x24c   : > { %3568 = vmatprep.subr.msk.bf16.mxu1 %vm4766_vm1, %v3566_v19 }
 0x24e   : > { %1494 = vrot.lane.b32.xlu0 %v4758_v30, %s4233_s10 }
 0x252   : > { %3318 = vmatmul.mubr.msk.f32.vlgmr.msra.gmra.mrb[4].mxu1 %vm1125_vm0, %v4756_v29 }
 0x253   : > { %3571 = vmatpush3.bf16.xpose.msk.msra.mxu1 %vm4766_vm1, %v3566_v19  ;;  %3324 = vmatprep.mubr.msk.f32.mxu1 %vm1125_vm0, %v4785_v37  ;;  %v881_v19 = vld [vmem:[#allocation13 + $0x10] sm:$0xff] }
 0x254   : > { %v3500_v23 = vpack.c.bf16 %v882_v22, %v881_v19  ;;  %v4924_v19 = vand.u32 127, %v1088_v49 }
 0x256   : > { %3501 = vmatprep.subr.bf16.mxu0 %v3500_v23  ;;  %vm1124_vm2 = vcmp.eq.s32.totalorder %v4924_v19, %v4818_v52 }
 0x257   : > { %3503 = vmatpush3.bf16.msra.mxu0 %v3500_v23 }
 0x258   : > { %3505 = vmatprep.subr.bf16.mxu0 %v3504_v26 }
 0x25a   : > { %3325 = vmatmul.mubr.msk.f32.vlgmr.msra.gmra.mrb[6].mxu1 %vm1125_vm0, %v4793_v38 }
 0x25b   : > { %3507 = vmatpush3.bf16.msra.mxu0 %v3504_v26 }
 0x25c   : > { %3509 = vmatprep.subr.bf16.mxu0 %v3508_v32 }
 0x25f   : > { %3511 = vmatpush3.bf16.msra.mxu0 %v3508_v32 }
 0x2a2   : > { %v1497_v44 = vpop.permute.xlu1 %1496 }
 0x2bc   : > { %v3784_v39 = vpop.permute.xlu0 %3783 }
 0x2bd   : > { %v3786_v40 = vunpack.i.h.bf16 %v3784_v39  ;;  %v3785_v41 = vunpack.i.l.bf16 %v3784_v39  ;;  %v3512_v39 = vpack.c.bf16 %v888_v36, %v887_v34 }
 0x2bf   : > { %v3576_v42 = vpack.c.bf16 %v3786_v40, %v3785_v41  ;;  %v889_v40 = vld [vmem:[#allocation13 + $0x50] sm:$0xff]  ;;  %v890_v41 = vld [vmem:[#allocation13 + $0x58] sm:$0xff]  ;;  %3513 = vmatprep.subr.bf16.mxu0 %v3512_v39 }
 0x2c0   : > { %v1495_v43 = vpop.permute.xlu0 %1494  ;;  %3515 = vmatpush3.bf16.msra.mxu0 %v3512_v39 }
 0x2c1   : > { %3578 = vmatprep.subr.msk.bf16.mxu1 %vm4766_vm1, %v3576_v42  ;;  %3338 = vmatprep.mubr.msk.f32.mxu1 %vm1125_vm0, %v1495_v43  ;;  %v891_v43 = vld [vmem:[#allocation13 + $0x60] sm:$0xff] }
 0x2c2   : > { %3581 = vmatpush3.bf16.xpose.msk.msra.mxu1 %vm4766_vm1, %v3576_v42  ;;  %v3516_v42 = vpack.c.bf16 %v890_v41, %v889_v40 }
 0x2c4   : > { %3517 = vmatprep.subr.bf16.mxu0 %v3516_v42 }
 0x2c5   : > { %3519 = vmatpush3.bf16.msra.mxu0 %v3516_v42 }
 0x2c9   : > { %3339 = vmatmul.mubr.msk.f32.vlgmr.msra.gmra.mrb[8].mxu1 %vm1125_vm0, %v1497_v44  ;;  %v892_v44 = vld [vmem:[#allocation13 + $0x68] sm:$0xff] }
 0x325   : > { %v3319_v45 = vpop.f32.mrb[4].mxu1 }
 0x326   : > { %1217 = vrot.lane.b32.xlu0 %v3319_v45, %s4234_s5  ;;  %v1204_v46 = vpop.f32.mrb[5].mxu1 }
 0x327   : > { %1215 = vrot.lane.b32.xlu1 %v1204_v46, %s4234_s5 }
 0x32a   : > { %1223 = vrot.lane.b32.xlu0 %v3319_v45, %s4235_s21 }
 0x32b   : > { %1221 = vrot.lane.b32.xlu1 %v1204_v46, %s4235_s21 }
 0x32d   : > { %v4807_v47 = vpop.f32.mrb[6].mxu1 }
 0x32e   : > { %v4809_v48 = vpop.f32.mrb[7].mxu1 }
 0x398   : > { %v1218_v56 = vpop.permute.xlu0 %1217 }
 0x399   : > { %v1216_v58 = vpop.permute.xlu1 %1215 }
 0x39c   : > { %v1224_v60 = vpop.permute.xlu0 %1223  ;;  %v4833_v61 = vpop.f32.mrb[8].mxu1 }
 0x39d   : > { %v1229_v63 = vsel %vm1227_vm3, %v1218_v56, %v1224_v60  ;;  %v1222_v0 = vpop.permute.xlu1 %1221  ;;  %v4840_v1 = vpop.f32.mrb[9].mxu1  ;;  %v1109_v60 = vshra.s32 %v4825_v54, 2 }
 0x39e   : > { %v1228_v2 = vsel %vm1227_vm3, %v1216_v58, %v1222_v0  ;;  %v1231_v3 = vsel %vm4829_vm4, %v1229_v63, %v3319_v45  ;;  %v3520_v45 = vpack.c.bf16 %v892_v44, %v891_v43  ;;  %v1110_v58 = vshra.s32 %v4822_v53, 2 }
 0x39f   : > { %1236 = vrot.lane.b32.xlu0 %v1231_v3, %s4236_s20  ;;  %v1230_v4 = vsel %vm4835_vm5, %v1228_v2, %v1204_v46  ;;  %v893_v46 = vld [vmem:[#allocation13 + $0x70] sm:$0xff]  ;;  %v4885_v2 = vand.u32 1, %v1109_v60 }
 0x3a0   : > { %1234 = vrot.lane.b32.xlu1 %v1230_v4, %s4236_s20  ;;  %3521 = vmatprep.subr.bf16.mxu0 %v3520_v45  ;;  %v3524_v56 = vpack.c.bf16 %v894_v55, %v893_v46  ;;  %v4883_v63 = vand.u32 1, %v1110_v58 }
 0x3a1   : > { %3523 = vmatpush3.bf16.msra.mxu0 %v3520_v45  ;;  %vm5330_vm11 = vcmp.eq.s32.totalorder %v4885_v2, 1 }
 0x3a2   : > { %3525 = vmatprep.subr.bf16.mxu0 %v3524_v56  ;;  %vm5325_vm10 = vcmp.eq.s32.totalorder %v4883_v63, 1 }
 0x3a3   : > { %1242 = vrot.lane.b32.xlu0 %v1231_v3, %s4237_s1 }
 0x3a4   : > { %1240 = vrot.lane.b32.xlu1 %v1230_v4, %s4237_s1 }
 0x3a5   : > { %3527 = vmatpush3.bf16.msra.mxu0 %v3524_v56 }
 0x3a8   : > { %3276 = vmatmul.mubr.f32.vlgmr.msra.gmra.mrb[2].mxu0 %v878_v57 }
 0x411   : > { %v1237_v8 = vpop.permute.xlu0 %1236 }
 0x412   : > { %v1235_v10 = vpop.permute.xlu1 %1234 }
 0x415   : > { %v1243_v11 = vpop.permute.xlu0 %1242 }
 0x416   : > { %v1248_v12 = vsel %vm1246_vm6, %v1237_v8, %v1243_v11  ;;  %v1241_v13 = vpop.permute.xlu1 %1240 }
 0x417   : > { %v1247_v14 = vsel %vm1246_vm6, %v1235_v10, %v1241_v13  ;;  %v4863_v15 = vsel %vm5329_vm7, %v1248_v12, %v1231_v3  ;;  %v1116_v12 = vshra.s32 %v4822_v53, 3  ;;  %v1115_v13 = vshra.s32 %v4825_v54, 3 }
 0x418   : > { %1255 = vrot.lane.b32.xlu0 %v4863_v15, %s4238_s22  ;;  %v4869_v16 = vsel %vm5332_vm8, %v1247_v14, %v1230_v4 }
 0x419   : > { %1253 = vrot.lane.b32.xlu1 %v4869_v16, %s4238_s22  ;;  %v4917_v14 = vand.u32 1, %v1116_v12 }
 0x41b   : > { %vm5326_vm13 = vcmp.eq.s32.totalorder %v4917_v14, 1 }
 0x41c   : > { %1261 = vrot.lane.b32.xlu0 %v4863_v15, %s4239_s13 }
 0x41d   : > { %1259 = vrot.lane.b32.xlu1 %v4869_v16, %s4239_s13 }
 0x48a   : > { %v1256_v0 = vpop.permute.xlu0 %1255 }
 0x48b   : > { %v1254_v3 = vpop.permute.xlu1 %1253 }
 0x48e   : > { %v1262_v4 = vpop.permute.xlu0 %1261 }
 0x48f   : > { %v1267_v5 = vsel %vm5331_vm9, %v1256_v0, %v1262_v4  ;;  %v1260_v6 = vpop.permute.xlu1 %1259  ;;  %v3277_v4 = vpop.f32.mrb[2].mxu0 }
 0x490   : > { %v1266_v8 = vsel %vm5331_vm9, %v1254_v3, %v1260_v6  ;;  %v1269_v10 = vsel %vm5325_vm10, %v1267_v5, %v4863_v15  ;;  %vm1123_vm10 = vcmp.eq.s32.totalorder %v4924_v19, %v4825_v54  ;;  %v2982_v5 = vld [vmem:[%s5388_s25] ss:$0 sm:$0xff] }
 0x491   : > { %1274 = vrot.lane.b32.xlu0 %v1269_v10, %s4240_s12  ;;  %v1268_v11 = vsel %vm5330_vm11, %v1266_v8, %v4869_v16  ;;  %v4919_v16 = vand.u32 1, %v1115_v13  ;;  %v4978_v6 = vadd.f32 %v3277_v4, %v2982_v5 }
 0x492   : > { %1272 = vrot.lane.b32.xlu1 %v1268_v11, %s4240_s12 }
 0x493   : > { %vm5328_vm14 = vcmp.eq.s32.totalorder %v4919_v16, 1 }
 0x495   : > { %1280 = vrot.lane.b32.xlu0 %v1269_v10, %s4241_s19 }
 0x496   : > { %1278 = vrot.lane.b32.xlu1 %v1268_v11, %s4241_s19 }
 0x499   : > { %1670 = vrot.lane.b32.xlu0 %v4785_v37, %s4233_s10 }
 0x49a   : > { %3788 = vrot.lane.b32.xlu1 %v4748_v20, %s4233_s10 }
 0x49d   : > { %1587 = vrot.lane.b32.xlu0 %v4840_v1, %s4234_s5 }
 0x49e   : > { %1672 = vrot.lane.b32.xlu1 %v4793_v38, %s4233_s10 }
 0x4a1   : > { %1593 = vrot.lane.b32.xlu0 %v4840_v1, %s4235_s21 }
 0x4a2   : > { %1589 = vrot.lane.b32.xlu1 %v4833_v61, %s4234_s5 }
 0x4a6   : > { %1595 = vrot.lane.b32.xlu1 %v4833_v61, %s4235_s21 }
 0x503   : > { %v1275_v15 = vpop.permute.xlu0 %1274 }
 0x504   : > { %v1273_v17 = vpop.permute.xlu1 %1272 }
 0x507   : > { %v1281_v18 = vpop.permute.xlu0 %1280 }
 0x508   : > { %v1286_v21 = vsel %vm5327_vm12, %v1275_v15, %v1281_v18  ;;  %v1279_v53 = vpop.permute.xlu1 %1278 }
 0x509   : > { %v1288_v22 = vsel %vm5326_vm13, %v1286_v21, %v1269_v10  ;;  %v1285_v23 = vsel %vm5327_vm12, %v1273_v17, %v1279_v53  ;;  %vm1122_vm13 = vcmp.le.s32.totalorder %v4924_v19, %v4815_v51  ;;  %vm1121_vm12 = vcmp.le.s32.totalorder %v4924_v19, %v4812_v50 }
 0x50a   : > { %v1293_v24 = vrot.slane %v1288_v22, 1  ;;  %v1287_v25 = vsel %vm5328_vm14, %v1285_v23, %v1268_v11  ;;  %vm1390_vm14 = vcmask 130048  }
 0x50b   : > { %v1292_v26 = vrot.slane %v1287_v25, 1  ;;  %v1671_v27 = vpop.permute.xlu0 %1670 }
 0x50c   : > { %v3789_v49 = vpop.permute.xlu1 %3788  ;;  %3345 = vmatprep.mubr.msk.f32.mxu1 %vm1125_vm0, %v1671_v27 }
 0x50d   : > { %v3791_v28 = vunpack.i.h.bf16 %v3789_v49  ;;  %v3790_v31 = vunpack.i.l.bf16 %v3789_v49  ;;  %v1298_v32 = vsel %vm1291_vm15, %v1293_v24, %v1292_v26  ;;  %v1294_v34 = vsel %vm1291_vm15, %v1292_v26, %v1293_v24 }
 0x50e   : > { %v1300_v36 = vsel %vm1124_vm2, 0.0, %v1298_v32  ;;  %v1299_v39 = vsel %vm1123_vm10, 0.0, %v1294_v34 }
 0x50f   : > { %v3582_v40 = vpack.c.bf16 %v3791_v28, %v3790_v31  ;;  %v1302_v41 = vsel %vm1122_vm13, %v1288_v22, %v1300_v36  ;;  %v1301_v42 = vsel %vm1121_vm12, %v1287_v25, %v1299_v39  ;;  %v1588_v57 = vpop.permute.xlu0 %1587 }
 0x510   : > { %v1387_v43 = vadd.f32 %v4807_v47, %v1302_v41  ;;  %v1382_v44 = vadd.f32 %v4809_v48, %v1301_v42  ;;  %v1673_v45 = vpop.permute.xlu1 %1672 }
 0x511   : > { %3584 = vmatprep.subr.msk.bf16.mxu1 %vm4766_vm1, %v3582_v40 }
 0x512   : > { %3587 = vmatpush3.bf16.xpose.msk.msra.mxu1 %vm4766_vm1, %v3582_v40  ;;  %v1394_v46 = vsel %vm1390_vm14, %v1387_v43, -inf  ;;  %v1391_v55 = vsel %vm1390_vm14, %v1382_v44, -inf }
 0x513   : > { %1395 = vmax.xlane.f32.xlu1 %v1394_v46  ;;  %1392 = vmax.xlane.f32.xlu0 %v1391_v55  ;;  %v1594_v58 = vpop.permute.xlu0 %1593 }
 0x514   : > { %v1590_v56 = vpop.permute.xlu1 %1589  ;;  %v1599_v0 = vsel %vm1227_vm3, %v1588_v57, %v1594_v58 }
 0x515   : > { %v1601_v3 = vsel %vm4835_vm5, %v1599_v0, %v4840_v1 }
 0x518   : > { %v1596_v47 = vpop.permute.xlu1 %1595 }
 0x519   : > { %3346 = vmatmul.mubr.msk.f32.vlgmr.msra.gmra.mrb[10].mxu1 %vm1125_vm0, %v1673_v45  ;;  %v1600_v48 = vsel %vm1227_vm3, %v1590_v56, %v1596_v47 }
 0x51a   : > { %v1602_v60 = vsel %vm4829_vm4, %v1600_v48, %v4833_v61  ;;  %v968_v61 = vpop.f32.mrb[3].mxu0 }
 0x51b   : > { %v4980_v8 = vadd.f32 %v2982_v5, %v968_v61 }
 0x51d   : > { %v3572_v10 = vpack.c.bf16 %v4978_v6, %v4980_v8 }
 0x51f   : > { %3573 = vmatprep.subr.bf16.mxu0 %v3572_v10 }
 0x520   : > { %3575 = vmatpush3.bf16.msra.mxu0 %v3572_v10 }
 0x524   : > { %1607 = vrot.lane.b32.xlu1 %v1602_v60, %s4236_s20 }
 0x528   : > { %1613 = vrot.lane.b32.xlu1 %v1602_v60, %s4237_s1 }
 0x529   : > { %1605 = vrot.lane.b32.xlu0 %v1601_v3, %s4236_s20 }
 0x52d   : > { %1611 = vrot.lane.b32.xlu0 %v1601_v3, %s4237_s1 }
 0x531   : > { %3793 = vrot.lane.b32.xlu0 %v4770_v35, %s4242_s18 }
 0x5a0   : > { %v1396_v1 = vpop.xlane.xlu1 %1395  ;;  %v1393_v11 = vpop.xlane.xlu0 %1392 }
 0x5a1   : > { %v1397_v27 = vsub.f32 %v1382_v44, %v1393_v11  ;;  %v1398_v28 = vsub.f32 %v1387_v43, %v1396_v1 }
 0x5a3   : > { %v1399_v49 = vmul.f32 1.442695, %v1397_v27  ;;  %v1401_v31 = vmul.f32 1.442695, %v1398_v28 }
 0x5a4   : > { %v1608_v12 = vpop.permute.xlu1 %1607  ;;  %v1606_v13 = vpop.permute.xlu0 %1605 }
 0x5a5   : > { %3842 = vpow2.f32 %v1399_v49 }
 0x5a6   : > { %3844 = vpow2.f32 %v1401_v31 }
 0x5a8   : > { %v1614_v15 = vpop.permute.xlu1 %1613  ;;  %v1612_v17 = vpop.permute.xlu0 %1611 }
 0x5a9   : > { %v1618_v18 = vsel %vm1246_vm6, %v1608_v12, %v1614_v15  ;;  %v1617_v21 = vsel %vm1246_vm6, %v1606_v13, %v1612_v17 }
 0x5aa   : > { %v1620_v53 = vsel %vm5329_vm7, %v1618_v18, %v1602_v60  ;;  %v1619_v22 = vsel %vm5332_vm8, %v1617_v21, %v1601_v3  ;;  %vm5389_vm7 = vcmp.eq.s32.totalorder %v4883_v63, 1  ;;  %vm5393_vm8 = vcmp.eq.s32.totalorder %v4917_v14, 1 }
 0x5ab   : > { %1625 = vrot.lane.b32.xlu0 %v1620_v53, %s4238_s22  ;;  %1623 = vrot.lane.b32.xlu1 %v1619_v22, %s4238_s22 }
 0x5ac   : > { %v3794_v23 = vpop.permute.xlu0 %3793 }
 0x5ad   : > { %v3796_v24 = vunpack.i.h.bf16 %v3794_v23  ;;  %v3795_v25 = vunpack.i.l.bf16 %v3794_v23 }
 0x5af   : > { %v3592_v26 = vpack.c.bf16 %v3796_v24, %v3795_v25  ;;  %1629 = vrot.lane.b32.xlu1 %v1619_v22, %s4239_s13  ;;  %v3843_v32 = vpop.eup %3842 }
 0x5b0   : > { %v1403_v34 = vsel %vm1390_vm14, %v3843_v32, 0.0  ;;  %v3845_v36 = vpop.eup %3844 }
 0x5b1   : > { %3594 = vmatprep.subr.msk.bf16.mxu0 %vm4766_vm1, %v3592_v26  ;;  %v1406_v39 = vsel %vm1390_vm14, %v3845_v36, 0.0 }
 0x5ca   : > { %1404 = vadd.xlane.f32.xlu0 %v1403_v34 }
 0x5d3   : > { %1407 = vadd.xlane.f32.xlu1 %v1406_v39 }
 0x5e0   : > { %1631 = vrot.lane.b32.xlu0 %v1620_v53, %s4239_s13 }
 0x5e4   : > { %1874 = vrot.lane.b32.xlu0 %v4756_v29, %s4242_s18  ;;  %1872 = vrot.lane.b32.xlu1 %v4758_v30, %s4242_s18 }
 0x5ec   : > { %v3347_v40 = vpop.f32.mrb[10].mxu1 }
 0x5ed   : > { %v1752_v41 = vpop.f32.mrb[11].mxu1 }
 0x61d   : > { %v1624_v42 = vpop.permute.xlu1 %1623  ;;  %v1626_v46 = vpop.permute.xlu0 %1625 }
 0x621   : > { %v1630_v43 = vpop.permute.xlu1 %1629 }
 0x622   : > { %v1635_v44 = vsel %vm5331_vm9, %v1624_v42, %v1630_v43 }
 0x623   : > { %v1637_v45 = vsel %vm5330_vm11, %v1635_v44, %v1619_v22  ;;  %vm5391_vm11 = vcmp.eq.s32.totalorder %v4919_v16, 1 }
 0x624   : > { %1641 = vrot.lane.b32.xlu1 %v1637_v45, %s4240_s12 }
 0x628   : > { %1647 = vrot.lane.b32.xlu1 %v1637_v45, %s4241_s19 }
 0x657   : > { %v1405_v55 = vpop.xlane.xlu0 %1404 }
 0x658   : > { %3846 = vrcp.f32 %v1405_v55 }
 0x65b   : > { %v1632_v56 = vpop.permute.xlu0 %1631 }
 0x65c   : > { %v1636_v57 = vsel %vm5331_vm9, %v1626_v46, %v1632_v56 }
 0x65d   : > { %v1638_v47 = vsel %vm5389_vm7, %v1636_v57, %v1620_v53  ;;  %vm5390_vm7 = vcmask 64512  }
 0x65e   : > { %1643 = vrot.lane.b32.xlu0 %v1638_v47, %s4240_s12  ;;  %vm5392_vm9 = vmmov %vm5390_vm7 }
 0x65f   : > { %v1875_v5 = vpop.permute.xlu0 %1874 }
 0x660   : > { %v1408_v48 = vpop.xlane.xlu1 %1407 }
 0x661   : > { %3848 = vrcp.f32 %v1408_v48 }
 0x662   : > { %v3847_v58 = vpop.eup %3846  ;;  %1649 = vrot.lane.b32.xlu0 %v1638_v47, %s4241_s19 }
 0x663   : > { %v1411_v60 = vmul.f32 %v3847_v58, %v3843_v32 }
 0x664   : > { %v1873_v4 = vpop.permute.xlu1 %1872 }
 0x665   : > { %3331 = vmatprep.mubr.msk.f32.mxu0 %vm1390_vm14, %v1411_v60 }
 0x66b   : > { %v3849_v0 = vpop.eup %3848 }
 0x66c   : > { %v1412_v3 = vmul.f32 %v3849_v0, %v3845_v36 }
 0x66e   : > { %3332 = vmatmul.mubr.msk.f32.vlgmr.msra.gmra.mrb[4].mxu0 %vm1390_vm14, %v1412_v3 }
 0x66f   : > { %3597 = vmatpush3.bf16.xpose.msk.msra.mxu0 %vm4766_vm1, %v3592_v26  ;;  %3359 = vmatprep.mubr.msk.f32.mxu0 %vm1125_vm0, %v1873_v4 }
 0x676   : > { %3360 = vmatmul.mubr.msk.f32.vlgmr.msra.gmra.mrb[6].mxu0 %vm1125_vm0, %v1875_v5 }
 0x696   : > { %v1642_v61 = vpop.permute.xlu1 %1641 }
 0x69a   : > { %v1648_v10 = vpop.permute.xlu1 %1647 }
 0x69b   : > { %v1653_v11 = vsel %vm5390_vm7, %v1642_v61, %v1648_v10  ;;  %vm5397_vm7 = vcmp.eq.s32.totalorder %v4885_v2, 1 }
 0x69c   : > { %v1655_v12 = vsel %vm5391_vm11, %v1653_v11, %v1637_v45  ;;  %vm5396_vm11 = vcmask 31744  }
 0x69d   : > { %v1659_v18 = vrot.slane %v1655_v12, 1 }
 0x6d0   : > { %v1644_v1 = vpop.permute.xlu0 %1643 }
 0x6d4   : > { %v1650_v13 = vpop.permute.xlu0 %1649 }
 0x6d5   : > { %v1654_v15 = vsel %vm5392_vm9, %v1644_v1, %v1650_v13  ;;  %vm5395_vm9 = vcmp.eq.s32.totalorder %v4853_v7, 1 }
 0x6d6   : > { %v1656_v17 = vsel %vm5393_vm8, %v1654_v15, %v1638_v47  ;;  %v5056_v47 = vpack.i.bf16 %v4978_v6, %v4980_v8  ;;  %vm5394_vm8 = vcmp.eq.s32.totalorder %v4855_v9, 1 }
 0x6d7   : > { %v1660_v21 = vrot.slane %v1656_v17, 1 }
 0x6d9   : > { %v1665_v53 = vsel %vm1291_vm15, %v1660_v21, %v1659_v18  ;;  %v1661_v22 = vsel %vm1291_vm15, %v1659_v18, %v1660_v21 }
 0x6da   : > { %v1667_v23 = vsel %vm1124_vm2, 0.0, %v1665_v53  ;;  %v1666_v24 = vsel %vm1123_vm10, 0.0, %v1661_v22 }
 0x6db   : > { %v1669_v25 = vsel %vm1122_vm13, %v1656_v17, %v1667_v23  ;;  %v1668_v26 = vsel %vm1121_vm12, %v1655_v12, %v1666_v24 }
 0x6dc   : > { %v1758_v27 = vadd.f32 %v3347_v40, %v1669_v25  ;;  %v1753_v49 = vadd.f32 %v1752_v41, %v1668_v26 }
 0x6de   : > { %v1764_v28 = vsel %vm1390_vm14, %v1758_v27, -inf  ;;  %v1761_v31 = vsel %vm1390_vm14, %v1753_v49, -inf }
 0x6df   : > { %1765 = vmax.xlane.f32.xlu0 %v1764_v28  ;;  %1762 = vmax.xlane.f32.xlu1 %v1761_v31 }
 0x6f0   : > { %3803 = vrot.lane.b32.xlu1 %v4748_v20, %s4242_s18 }
 0x741   : > { %v5045_v32 = vpop.f32.mrb[4].mxu0 }
 0x742   : > { %v5047_v34 = vpop.f32.mrb[5].mxu0 }
 0x749   : > { %v3361_v36 = vpop.f32.mrb[6].mxu0 }
 0x74a   : > { %v1954_v39 = vpop.f32.mrb[7].mxu0 }
 0x76c   : > { %v1766_v42 = vpop.xlane.xlu0 %1765  ;;  %v1763_v43 = vpop.xlane.xlu1 %1762 }
 0x76d   : > { %v1768_v44 = vsub.f32 %v1758_v27, %v1766_v42  ;;  %v1767_v40 = vsub.f32 %v1753_v49, %v1763_v43 }
 0x76f   : > { %v1771_v41 = vmul.f32 1.442695, %v1768_v44  ;;  %v1769_v45 = vmul.f32 1.442695, %v1767_v40 }
 0x770   : > { %v3804_v48 = vpop.permute.xlu1 %3803 }
 0x771   : > { %3850 = vpow2.f32 %v1771_v41  ;;  %v3806_v8 = vunpack.i.h.bf16 %v3804_v48  ;;  %v3805_v3 = vunpack.i.l.bf16 %v3804_v48 }
 0x772   : > { %3852 = vpow2.f32 %v1769_v45 }
 0x773   : > { %v3598_v11 = vpack.c.bf16 %v3806_v8, %v3805_v3 }
 0x77b   : > { %v3851_v46 = vpop.eup %3850 }
 0x77c   : > { %v3853_v55 = vpop.eup %3852  ;;  %v1776_v56 = vsel %vm1390_vm14, %v3851_v46, 0.0 }
 0x77d   : > { %1777 = vadd.xlane.f32.xlu1 %v1776_v56  ;;  %v1773_v57 = vsel %vm1390_vm14, %v3853_v55, 0.0 }
 0x77e   : > { %1774 = vadd.xlane.f32.xlu0 %v1773_v57 }
 0x78e   : > { %2048 = vrot.lane.b32.xlu1 %v4785_v37, %s4242_s18 }
 0x792   : > { %1965 = vrot.lane.b32.xlu1 %v1954_v39, %s4234_s5 }
 0x794   : > { %3798 = vrot.lane.b32.xlu0 %v5056_v47, %s4233_s10 }
 0x796   : > { %1971 = vrot.lane.b32.xlu1 %v1954_v39, %s4235_s21 }
 0x798   : > { %2050 = vrot.lane.b32.xlu0 %v4793_v38, %s4242_s18 }
 0x79c   : > { %1967 = vrot.lane.b32.xlu0 %v3361_v36, %s4234_s5 }
 0x7a0   : > { %1973 = vrot.lane.b32.xlu0 %v3361_v36, %s4235_s21 }
 0x80a   : > { %v1778_v58 = vpop.xlane.xlu1 %1777 }
 0x80b   : > { %v1775_v60 = vpop.xlane.xlu0 %1774  ;;  %3854 = vrcp.f32 %v1778_v58 }
 0x80c   : > { %3856 = vrcp.f32 %v1775_v60 }
 0x80e   : > { %v2049_v0 = vpop.permute.xlu1 %2048 }
 0x80f   : > { %v3799_v6 = vpop.permute.xlu0 %3798 }
 0x810   : > { %v3801_v4 = vunpack.i.h.bf16 %v3799_v6  ;;  %v3800_v5 = vunpack.i.l.bf16 %v3799_v6 }
 0x812   : > { %v3588_v61 = vpack.c.bf16 %v3801_v4, %v3800_v5  ;;  %v1966_v10 = vpop.permute.xlu1 %1965 }
 0x813   : > { %v2051_v1 = vpop.permute.xlu0 %2050 }
 0x814   : > { %3589 = vmatprep.subr.bf16.mxu1 %v3588_v61 }
 0x815   : > { %v3855_v12 = vpop.eup %3854  ;;  %3591 = vmatpush3.bf16.msra.mxu1 %v3588_v61 }
 0x816   : > { %v3857_v13 = vpop.eup %3856  ;;  %v1782_v15 = vmul.f32 %v3855_v12, %v3851_v46  ;;  %3600 = vmatprep.subr.msk.bf16.mxu1 %vm4766_vm1, %v3598_v11  ;;  %v1972_v17 = vpop.permute.xlu1 %1971 }
 0x817   : > { %v1968_v18 = vpop.permute.xlu0 %1967  ;;  %v1977_v21 = vsel %vm1227_vm3, %v1966_v10, %v1972_v17  ;;  %v1781_v53 = vmul.f32 %v3857_v13, %v3853_v55 }
 0x818   : > { %v1979_v22 = vsel %vm4835_vm5, %v1977_v21, %v1954_v39 }
 0x819   : > { %3352 = vmatprep.mubr.msk.f32.mxu1 %vm1390_vm14, %v1781_v53  ;;  %1983 = vrot.lane.b32.xlu1 %v1979_v22, %s4236_s20 }
 0x81a   : > { %3353 = vmatmul.mubr.msk.f32.vlgmr.msra.gmra.mrb[12].mxu1 %vm1390_vm14, %v1782_v15 }
 0x81b   : > { %3366 = vmatprep.mubr.msk.f32.mxu1 %vm1125_vm0, %v2049_v0  ;;  %v1974_v23 = vpop.permute.xlu0 %1973 }
 0x81c   : > { %v1978_v24 = vsel %vm1227_vm3, %v1968_v18, %v1974_v23 }
 0x81d   : > { %v1980_v25 = vsel %vm4829_vm4, %v1978_v24, %v3361_v36  ;;  %1989 = vrot.lane.b32.xlu1 %v1979_v22, %s4237_s1 }
 0x81e   : > { %3603 = vmatpush3.bf16.xpose.msk.msra.mxu1 %vm4766_vm1, %v3598_v11  ;;  %1985 = vrot.lane.b32.xlu0 %v1980_v25, %s4236_s20 }
 0x821   : > { %3808 = vrot.lane.b32.xlu1 %v4770_v35, %s4243_s28 }
 0x822   : > { %1991 = vrot.lane.b32.xlu0 %v1980_v25, %s4237_s1 }
 0x825   : > { %3367 = vmatmul.mubr.msk.f32.vlgmr.msra.gmra.mrb[14].mxu1 %vm1125_vm0, %v2051_v1 }
 0x88b   : > { %v1984_v26 = vpop.permute.xlu1 %1983 }
 0x88f   : > { %v1990_v27 = vpop.permute.xlu1 %1989 }
 0x890   : > { %v1986_v49 = vpop.permute.xlu0 %1985  ;;  %v1995_v28 = vsel %vm1246_vm6, %v1984_v26, %v1990_v27 }
 0x891   : > { %v1997_v31 = vsel %vm5394_vm8, %v1995_v28, %v1979_v22  ;;  %vm5398_vm8 = vmmov %vm5396_vm11 }
 0x892   : > { %2001 = vrot.lane.b32.xlu0 %v1997_v31, %s4238_s22 }
 0x893   : > { %v3809_v36 = vpop.permute.xlu1 %3808 }
 0x894   : > { %v1992_v39 = vpop.permute.xlu0 %1991  ;;  %v3811_v42 = vunpack.i.h.bf16 %v3809_v36  ;;  %v3810_v43 = vunpack.i.l.bf16 %v3809_v36 }
 0x895   : > { %v1996_v35 = vsel %vm1246_vm6, %v1986_v49, %v1992_v39 }
 0x896   : > { %v3608_v44 = vpack.c.bf16 %v3811_v42, %v3810_v43  ;;  %v1998_v40 = vsel %vm5395_vm9, %v1996_v35, %v1980_v25  ;;  %2007 = vrot.lane.b32.xlu0 %v1997_v31, %s4239_s13  ;;  %vm5399_vm9 = vcmp.eq.s32.totalorder %v4883_v63, 1 }
 0x897   : > { %2003 = vrot.lane.b32.xlu1 %v1998_v40, %s4238_s22 }
 0x898   : > { %3610 = vmatprep.subr.msk.bf16.mxu1 %vm4766_vm1, %v3608_v44 }
 0x899   : > { %3613 = vmatpush3.bf16.xpose.msk.msra.mxu1 %vm4766_vm1, %v3608_v44 }
 0x89a   : > { %2248 = vrot.lane.b32.xlu0 %v4758_v30, %s4243_s28 }
 0x89b   : > { %2009 = vrot.lane.b32.xlu1 %v1998_v40, %s4239_s13 }
 0x89f   : > { %2250 = vrot.lane.b32.xlu1 %v4756_v29, %s4243_s28 }
 0x8ed   : > { %v5103_v41 = vpop.f32.mrb[12].mxu1 }
 0x8ee   : > { %v5105_v45 = vpop.f32.mrb[13].mxu1 }
 0x8ef   : > { %v3827_v46 = vpack.i.bf16 %v5103_v41, %v5105_v45  ;;  %v2660_v41 = vld [vmem:[#allocation16 + $0x20] sm:$0xff]  ;;  %v2661_v45 = vld [vmem:[#allocation16 + $0x28] sm:$0xff] }
 0x8f8   : > { %v3368_v55 = vpop.f32.mrb[14].mxu1 }
 0x8f9   : > { %v2130_v56 = vpop.f32.mrb[15].mxu1 }
 0x904   : > { %v2002_v57 = vpop.permute.xlu0 %2001 }
 0x908   : > { %v2008_v48 = vpop.permute.xlu0 %2007 }
 0x909   : > { %v2013_v58 = vsel %vm5396_vm11, %v2002_v57, %v2008_v48  ;;  %v2004_v60 = vpop.permute.xlu1 %2003  ;;  %vm5400_vm11 = vcmask 64512  }
 0x90a   : > { %v2015_v30 = vsel %vm5397_vm7, %v2013_v58, %v1997_v31  ;;  %vm5401_vm7 = vcmp.eq.s32.totalorder %v4919_v16, 1 }
 0x90b   : > { %2019 = vrot.lane.b32.xlu0 %v2015_v30, %s4240_s12 }
 0x90c   : > { %v2249_v29 = vpop.permute.xlu0 %2248 }
 0x90d   : > { %v2010_v0 = vpop.permute.xlu1 %2009  ;;  %3380 = vmatprep.mubr.msk.f32.mxu1 %vm1125_vm0, %v2249_v29 }
 0x90e   : > { %v2014_v6 = vsel %vm5398_vm8, %v2004_v60, %v2010_v0  ;;  %vm5402_vm8 = vmmov %vm5400_vm11 }
 0x90f   : > { %2025 = vrot.lane.b32.xlu0 %v2015_v30, %s4241_s19  ;;  %v2016_v8 = vsel %vm5399_vm9, %v2014_v6, %v1998_v40  ;;  %vm5403_vm9 = vcmp.eq.s32.totalorder %v4917_v14, 1 }
 0x910   : > { %2021 = vrot.lane.b32.xlu1 %v2016_v8, %s4240_s12 }
 0x911   : > { %v2251_v3 = vpop.permute.xlu1 %2250 }
 0x912   : > { %3381 = vmatmul.mubr.msk.f32.vlgmr.msra.gmra.mrb[16].mxu1 %vm1125_vm0, %v2251_v3 }
 0x914   : > { %2027 = vrot.lane.b32.xlu1 %v2016_v8, %s4241_s19 }
 0x97d   : > { %v2020_v4 = vpop.permute.xlu0 %2019 }
 0x981   : > { %v2026_v5 = vpop.permute.xlu0 %2025 }
 0x982   : > { %v2022_v61 = vpop.permute.xlu1 %2021  ;;  %v2031_v10 = vsel %vm5400_vm11, %v2020_v4, %v2026_v5  ;;  %vm5409_vm11 = vcmp.eq.s32.totalorder %v4885_v2, 1 }
 0x983   : > { %v2033_v1 = vsel %vm5401_vm7, %v2031_v10, %v2015_v30  ;;  %vm5410_vm7 = vmmov %vm5402_vm8 }
 0x984   : > { %v2037_v15 = vrot.slane %v2033_v1, 1 }
 0x986   : > { %v2028_v11 = vpop.permute.xlu1 %2027 }
 0x987   : > { %v2032_v12 = vsel %vm5402_vm8, %v2022_v61, %v2028_v11  ;;  %vm5411_vm8 = vmmov %vm5403_vm9 }
 0x988   : > { %v2034_v13 = vsel %vm5403_vm9, %v2032_v12, %v2016_v8  ;;  %vm5412_vm9 = vmmov %vm5410_vm7 }
 0x989   : > { %v2038_v17 = vrot.slane %v2034_v13, 1 }
 0x98b   : > { %v2043_v18 = vsel %vm1291_vm15, %v2038_v17, %v2037_v15  ;;  %v2039_v21 = vsel %vm1291_vm15, %v2037_v15, %v2038_v17 }
 0x98c   : > { %v2045_v53 = vsel %vm1124_vm2, 0.0, %v2043_v18  ;;  %v2044_v22 = vsel %vm1123_vm10, 0.0, %v2039_v21 }
 0x98d   : > { %v2047_v23 = vsel %vm1122_vm13, %v2034_v13, %v2045_v53  ;;  %v2046_v24 = vsel %vm1121_vm12, %v2033_v1, %v2044_v22 }
 0x98e   : > { %v2136_v25 = vadd.f32 %v3368_v55, %v2047_v23  ;;  %v2131_v26 = vadd.f32 %v2130_v56, %v2046_v24 }
 0x990   : > { %v2142_v27 = vsel %vm1390_vm14, %v2136_v25, -inf  ;;  %v2139_v49 = vsel %vm1390_vm14, %v2131_v26, -inf }
 0x991   : > { %2143 = vmax.xlane.f32.xlu1 %v2142_v27  ;;  %2140 = vmax.xlane.f32.xlu0 %v2139_v49 }
 0x9a2   : > { %3813 = vrot.lane.b32.xlu1 %v5056_v47, %s4242_s18 }
 0x9a6   : > { %2424 = vrot.lane.b32.xlu1 %v4785_v37, %s4243_s28 }
 0x9aa   : > { %2426 = vrot.lane.b32.xlu1 %v4793_v38, %s4243_s28 }
 0x9e5   : > { %v3382_v28 = vpop.f32.mrb[16].mxu1 }
 0x9e6   : > { %2343 = vrot.lane.b32.xlu1 %v3382_v28, %s4234_s5  ;;  %v2330_v31 = vpop.f32.mrb[17].mxu1 }
 0x9ea   : > { %2349 = vrot.lane.b32.xlu1 %v3382_v28, %s4235_s21 }
 0xa1e   : > { %v2144_v36 = vpop.xlane.xlu1 %2143  ;;  %v2141_v39 = vpop.xlane.xlu0 %2140 }
 0xa1f   : > { %v2146_v42 = vsub.f32 %v2136_v25, %v2144_v36  ;;  %v2145_v43 = vsub.f32 %v2131_v26, %v2141_v39 }
 0xa21   : > { %v2147_v35 = vmul.f32 1.442695, %v2145_v43  ;;  %v2149_v44 = vmul.f32 1.442695, %v2146_v42 }
 0xa22   : > { %v3814_v40 = vpop.permute.xlu1 %3813 }
 0xa23   : > { %v3816_v55 = vunpack.i.h.bf16 %v3814_v40  ;;  %v3815_v56 = vunpack.i.l.bf16 %v3814_v40  ;;  %3858 = vpow2.f32 %v2147_v35 }
 0xa24   : > { %3860 = vpow2.f32 %v2149_v44 }
 0xa25   : > { %v3604_v37 = vpack.c.bf16 %v3816_v55, %v3815_v56 }
 0xa26   : > { %v2425_v60 = vpop.permute.xlu1 %2424 }
 0xa27   : > { %3605 = vmatprep.subr.bf16.mxu0 %v3604_v37 }
 0xa28   : > { %3607 = vmatpush3.bf16.msra.mxu0 %v3604_v37 }
 0xa2a   : > { %v2427_v30 = vpop.permute.xlu1 %2426 }
 0xa2d   : > { %v3859_v38 = vpop.eup %3858 }
 0xa2e   : > { %v2151_v57 = vsel %vm1390_vm14, %v3859_v38, 0.0  ;;  %v3861_v48 = vpop.eup %3860 }
 0xa2f   : > { %2152 = vadd.xlane.f32.xlu0 %v2151_v57  ;;  %v2154_v58 = vsel %vm1390_vm14, %v3861_v48, 0.0 }
 0xa33   : > { %2155 = vadd.xlane.f32.xlu0 %v2154_v58 }
 0xa49   : > { %3818 = vrot.lane.b32.xlu0 %v4748_v20, %s4243_s28 }
 0xa4d   : > { %2341 = vrot.lane.b32.xlu0 %v2330_v31, %s4234_s5 }
 0xa51   : > { %2347 = vrot.lane.b32.xlu0 %v2330_v31, %s4235_s21  ;;  %s2750_s21 = scalar_lea.sflag [#allocation4], %s4698_s4 }
 0xa58   : > { %v2344_v29 = vpop.permute.xlu1 %2343 }
 0xa5c   : > { %v2350_v0 = vpop.permute.xlu1 %2349 }
 0xa5d   : > { %v2354_v6 = vsel %vm1227_vm3, %v2344_v29, %v2350_v0 }
 0xa5e   : > { %v2356_v8 = vsel %vm4829_vm4, %v2354_v6, %v3382_v28  ;;  %vm5406_vm4 = vcmask 31744  }
 0xa5f   : > { %2361 = vrot.lane.b32.xlu1 %v2356_v8, %s4236_s20 }
 0xa63   : > { %2367 = vrot.lane.b32.xlu1 %v2356_v8, %s4237_s1 }
 0xabc   : > { %v2153_v3 = vpop.xlane.xlu0 %2152 }
 0xabd   : > { %3862 = vrcp.f32 %v2153_v3 }
 0xac0   : > { %v2156_v20 = vpop.xlane.xlu0 %2155 }
 0xac1   : > { %3864 = vrcp.f32 %v2156_v20 }
 0xac4   : > { %v3819_v4 = vpop.permute.xlu0 %3818 }
 0xac5   : > { %v3821_v5 = vunpack.i.h.bf16 %v3819_v4  ;;  %v3820_v61 = vunpack.i.l.bf16 %v3819_v4 }
 0xac7   : > { %v3863_v10 = vpop.eup %3862  ;;  %v3614_v1 = vpack.c.bf16 %v3821_v5, %v3820_v61 }
 0xac8   : > { %v2342_v11 = vpop.permute.xlu0 %2341  ;;  %v2159_v12 = vmul.f32 %v3863_v10, %v3859_v38 }
 0xac9   : > { %3616 = vmatprep.subr.msk.bf16.mxu0 %vm4766_vm1, %v3614_v1 }
 0xaca   : > { %3373 = vmatprep.mubr.msk.f32.mxu0 %vm1390_vm14, %v2159_v12 }
 0xacb   : > { %v3865_v59 = vpop.eup %3864 }
 0xacc   : > { %v2160_v13 = vmul.f32 %v3865_v59, %v3861_v48  ;;  %v2348_v15 = vpop.permute.xlu0 %2347 }
 0xacd   : > { %v2353_v17 = vsel %vm1227_vm3, %v2342_v11, %v2348_v15  ;;  %vm5404_vm3 = vcmp.eq.s32.totalorder %v4853_v7, 1 }
 0xace   : > { %3374 = vmatmul.mubr.msk.f32.vlgmr.msra.gmra.mrb[8].mxu0 %vm1390_vm14, %v2160_v13  ;;  %v2355_v18 = vsel %vm4835_vm5, %v2353_v17, %v2330_v31  ;;  %vm5407_vm5 = vcmp.eq.s32.totalorder %v4883_v63, 1 }
 0xacf   : > { %3619 = vmatpush3.bf16.xpose.msk.msra.mxu0 %vm4766_vm1, %v3614_v1  ;;  %3387 = vmatprep.mubr.msk.f32.mxu0 %vm1125_vm0, %v2425_v60  ;;  %vm5405_vm1 = vcmp.eq.s32.totalorder %v4855_v9, 1 }
 0xad0   : > { %2359 = vrot.lane.b32.xlu0 %v2355_v18, %s4236_s20  ;;  %s4134_s20 = scalar_lea.vmem %s5235_s27, 256 }
 0xad1   : > { %v2362_v21 = vpop.permute.xlu1 %2361  ;;  %p4135_p5 = scmp.ne.s32.totalorder %s5235_s27, %s4134_s20 }
 0xad3   : > { %p4136_p3 = pnand %p4135_p5, %p5416_p12 }
 0xad4   : > { %2365 = vrot.lane.b32.xlu0 %v2355_v18, %s4237_s1 }
 0xad5   : > { %v2368_v53 = vpop.permute.xlu1 %2367  ;;  %p4137_p1 = pneg %p4136_p3 }
 0xad6   : > { %v2372_v22 = vsel %vm1246_vm6, %v2362_v21, %v2368_v53  ;;  %3388 = vmatmul.mubr.msk.f32.vlgmr.msra.gmra.mrb[10].mxu0 %vm1125_vm0, %v2427_v30 }
 0xad7   : > { %v2374_v23 = vsel %vm5404_vm3, %v2372_v22, %v2356_v8  ;;  %vm5413_vm3 = vcmp.eq.s32.totalorder %v4919_v16, 1  ;;  %v2656_v22 = vld [vmem:[#allocation16] sm:$0xff] }
 0xad8   : > { %2379 = vrot.lane.b32.xlu1 %v2374_v23, %s4238_s22 }
 0xadc   : > { %2385 = vrot.lane.b32.xlu1 %v2374_v23, %s4239_s13 }
 0xb42   : > { %v2360_v33 = vpop.permute.xlu0 %2359 }
 0xb46   : > { %v2366_v62 = vpop.permute.xlu0 %2365 }
 0xb47   : > { %v2371_v24 = vsel %vm1246_vm6, %v2360_v33, %v2366_v62  ;;  %vm5408_vm6 = vmmov %vm5406_vm4  ;;  %v2658_v33 = vld [vmem:[#allocation16 + $0x10] sm:$0xff] }
 0xb48   : > { %v2373_v25 = vsel %vm5405_vm1, %v2371_v24, %v2355_v18  ;;  %v2659_v24 = vld [vmem:[#allocation16 + $0x18] sm:$0xff] }
 0xb49   : > { %2377 = vrot.lane.b32.xlu0 %v2373_v25, %s4238_s22 }
 0xb4a   : > { %v2380_v26 = vpop.permute.xlu1 %2379 }
 0xb4d   : > { %2383 = vrot.lane.b32.xlu0 %v2373_v25, %s4239_s13 }
 0xb4e   : > { %v2386_v27 = vpop.permute.xlu1 %2385 }
 0xb4f   : > { %v2390_v7 = vsel %vm5406_vm4, %v2380_v26, %v2386_v27  ;;  %v2662_v26 = vld [vmem:[#allocation16 + $0x30] sm:$0xff]  ;;  %v2663_v27 = vld [vmem:[#allocation16 + $0x38] sm:$0xff] }
 0xb50   : > { %v2392_v49 = vsel %vm5407_vm5, %v2390_v7, %v2374_v23  ;;  %v2657_v23 = vld [vmem:[#allocation16 + $0x8] sm:$0xff]  ;;  %v3636_v7 = vpack.c.bf16 %v2663_v27, %v2662_v26 }
 0xb51   : > { %2397 = vrot.lane.b32.xlu1 %v2392_v49, %s4240_s12  ;;  %v3624_v62 = vpack.c.bf16 %v2657_v23, %v2656_v22 }
 0xb53   : > { %3625 = vmatprep.subr.bf16.mxu0 %v3624_v62 }
 0xb54   : > { %3627 = vmatpush3.bf16.msra.mxu0 %v3624_v62 }
 0xb55   : > { %2403 = vrot.lane.b32.xlu1 %v2392_v49, %s4241_s19 }
 0xba1   : > { %v3375_v28 = vpop.f32.mrb[8].mxu0 }
 0xba2   : > { %v2239_v31 = vpop.f32.mrb[9].mxu0 }
 0xba3   : > { %v3832_v36 = vpack.i.bf16 %v3375_v28, %v2239_v31  ;;  %v2665_v28 = vld [vmem:[#allocation16 + $0x48] sm:$0xff] }
 0xba9   : > { %v3389_v9 = vpop.f32.mrb[10].mxu0 }
 0xbaa   : > { %v2506_v39 = vpop.f32.mrb[11].mxu0 }
 0xbbb   : > { %v2378_v42 = vpop.permute.xlu0 %2377 }
 0xbbf   : > { %v2384_v43 = vpop.permute.xlu0 %2383 }
 0xbc0   : > { %v2389_v35 = vsel %vm5408_vm6, %v2378_v42, %v2384_v43  ;;  %v2668_v42 = vld [vmem:[#allocation16 + $0x60] sm:$0xff]  ;;  %v2669_v43 = vld [vmem:[#allocation16 + $0x68] sm:$0xff] }
 0xbc1   : > { %v2391_v44 = vsel %vm5409_vm11, %v2389_v35, %v2373_v25  ;;  %v3628_v25 = vpack.c.bf16 %v2659_v24, %v2658_v33  ;;  %v3648_v35 = vpack.c.bf16 %v2669_v43, %v2668_v42 }
 0xbc2   : > { %2395 = vrot.lane.b32.xlu0 %v2391_v44, %s4240_s12 }
 0xbc3   : > { %v2398_v63 = vpop.permute.xlu1 %2397  ;;  %3629 = vmatprep.subr.bf16.mxu0 %v3628_v25 }
 0xbc4   : > { %3631 = vmatpush3.bf16.msra.mxu0 %v3628_v25 }
 0xbc6   : > { %2401 = vrot.lane.b32.xlu0 %v2391_v44, %s4241_s19 }
 0xbc7   : > { %v2404_v40 = vpop.permute.xlu1 %2403 }
 0xbc8   : > { %v2408_v56 = vsel %vm5410_vm7, %v2398_v63, %v2404_v40  ;;  %v2671_v63 = vld [vmem:[#allocation16 + $0x78] sm:$0xff] }
 0xbc9   : > { %v2410_v37 = vsel %vm5411_vm8, %v2408_v56, %v2392_v49  ;;  %v2664_v49 = vld [vmem:[#allocation16 + $0x40] sm:$0xff] }
 0xbca   : > { %v2414_v2 = vrot.slane %v2410_v37, 1  ;;  %v3640_v31 = vpack.c.bf16 %v2665_v28, %v2664_v49 }
 0xc34   : > { %v2396_v55 = vpop.permute.xlu0 %2395 }
 0xc38   : > { %v2402_v38 = vpop.permute.xlu0 %2401 }
 0xc39   : > { %v2407_v57 = vsel %vm5412_vm9, %v2396_v55, %v2402_v38 }
 0xc3a   : > { %v2409_v48 = vsel %vm5413_vm3, %v2407_v57, %v2391_v44  ;;  %v2670_v44 = vld [vmem:[#allocation16 + $0x70] sm:$0xff] }
 0xc3b   : > { %v2413_v58 = vrot.slane %v2409_v48, 1  ;;  %v3652_v40 = vpack.c.bf16 %v2671_v63, %v2670_v44 }
 0xc3d   : > { %v2419_v60 = vsel %vm1291_vm15, %v2414_v2, %v2413_v58  ;;  %v2415_v30 = vsel %vm1291_vm15, %v2413_v58, %v2414_v2 }
 0xc3e   : > { %v2421_v29 = vsel %vm1124_vm2, 0.0, %v2419_v60  ;;  %v2420_v14 = vsel %vm1123_vm10, 0.0, %v2415_v30  ;;  %vm2650_vm10 = vcmask 523264  }
 0xc3f   : > { %v2423_v0 = vsel %vm1122_vm13, %v2410_v37, %v2421_v29  ;;  %v2422_v16 = vsel %vm1121_vm12, %v2409_v48, %v2420_v14  ;;  %vm2653_vm12 = vcmask 785408  }
 0xc40   : > { %v2512_v6 = vadd.f32 %v3389_v9, %v2423_v0  ;;  %v2507_v8 = vadd.f32 %v2506_v39, %v2422_v16  ;;  %v2667_v9 = vld [vmem:[#allocation16 + $0x58] sm:$0xff] }
 0xc42   : > { %v2518_v3 = vsel %vm1390_vm14, %v2512_v6, -inf  ;;  %v2515_v20 = vsel %vm1390_vm14, %v2507_v8, -inf }
 0xc43   : > { %2519 = vmax.xlane.f32.xlu1 %v2518_v3  ;;  %2516 = vmax.xlane.f32.xlu0 %v2515_v20 }
 0xc54   : > { %3823 = vrot.lane.b32.xlu1 %v5056_v47, %s4243_s28 }
 0xc58   : > { %3833 = vrot.lane.b32.xlu1 %v3832_v36, %s4242_s18  ;;  %v2666_v36 = vld [vmem:[#allocation16 + $0x50] sm:$0xff] }
 0xc59   : > { %v3644_v39 = vpack.c.bf16 %v2667_v9, %v2666_v36 }
 0xcd0   : > { %v2520_v52 = vpop.xlane.xlu1 %2519  ;;  %v2517_v51 = vpop.xlane.xlu0 %2516 }
 0xcd1   : > { %v2522_v54 = vsub.f32 %v2512_v6, %v2520_v52  ;;  %v2521_v4 = vsub.f32 %v2507_v8, %v2517_v51 }
 0xcd3   : > { %v2523_v5 = vmul.f32 1.442695, %v2521_v4  ;;  %v2525_v50 = vmul.f32 1.442695, %v2522_v54 }
 0xcd4   : > { %v3824_v19 = vpop.permute.xlu1 %3823 }
 0xcd5   : > { %v3826_v61 = vunpack.i.h.bf16 %v3824_v19  ;;  %v3825_v10 = vunpack.i.l.bf16 %v3824_v19  ;;  %3866 = vpow2.f32 %v2523_v5 }
 0xcd6   : > { %3868 = vpow2.f32 %v2525_v50 }
 0xcd7   : > { %v3620_v1 = vpack.c.bf16 %v3826_v61, %v3825_v10 }
 0xcd8   : > { %v3834_v2 = vpop.permute.xlu1 %3833 }
 0xcd9   : > { %3621 = vmatprep.subr.bf16.mxu1 %v3620_v1  ;;  %v3836_v30 = vunpack.i.h.bf16 %v3834_v2  ;;  %v3835_v29 = vunpack.i.l.bf16 %v3834_v2 }
 0xcda   : > { %3623 = vmatpush3.bf16.msra.mxu1 %v3620_v1 }
 0xcdf   : > { %v3867_v11 = vpop.eup %3866 }
 0xce0   : > { %v2527_v12 = vsel %vm1390_vm14, %v3867_v11, 0.0  ;;  %v3869_v47 = vpop.eup %3868 }
 0xce1   : > { %2528 = vadd.xlane.f32.xlu0 %v2527_v12  ;;  %v2530_v59 = vsel %vm1390_vm14, %v3869_v47, 0.0 }
 0xce5   : > { %2531 = vadd.xlane.f32.xlu0 %v2530_v59 }
 0xcfb   : > { %3828 = vrot.lane.b32.xlu0 %v3827_v46, %s4243_s28  ;;  %v3632_v46 = vpack.c.bf16 %v2661_v45, %v2660_v41 }
 0xcfd   : > { %3633 = vmatprep.subr.bf16.mxu0 %v3632_v46 }
 0xcfe   : > { %3635 = vmatpush3.bf16.msra.mxu0 %v3632_v46 }
 0xcff   : > { %3637 = vmatprep.subr.bf16.mxu0 %v3636_v7 }
 0xd02   : > { %3639 = vmatpush3.bf16.msra.mxu0 %v3636_v7 }
 0xd03   : > { %3641 = vmatprep.subr.bf16.mxu0 %v3640_v31 }
 0xd06   : > { %3643 = vmatpush3.bf16.msra.mxu0 %v3640_v31 }
 0xd07   : > { %3645 = vmatprep.subr.bf16.mxu0 %v3644_v39 }
 0xd0a   : > { %3647 = vmatpush3.bf16.msra.mxu0 %v3644_v39 }
 0xd0b   : > { %3649 = vmatprep.subr.bf16.mxu0 %v3648_v35 }
 0xd0e   : > { %3651 = vmatpush3.bf16.msra.mxu0 %v3648_v35 }
 0xd0f   : > { %3653 = vmatprep.subr.bf16.mxu0 %v3652_v40 }
 0xd12   : > { %3655 = vmatpush3.bf16.msra.mxu0 %v3652_v40 }
 0xd6e   : > { %v2529_v13 = vpop.xlane.xlu0 %2528 }
 0xd6f   : > { %3870 = vrcp.f32 %v2529_v13 }
 0xd72   : > { %v2532_v15 = vpop.xlane.xlu0 %2531 }
 0xd73   : > { %3872 = vrcp.f32 %v2532_v15 }
 0xd76   : > { %v3829_v38 = vpop.permute.xlu0 %3828 }
 0xd77   : > { %v3831_v57 = vunpack.i.h.bf16 %v3829_v38  ;;  %v3830_v48 = vunpack.i.l.bf16 %v3829_v38 }
 0xd79   : > { %v3871_v17 = vpop.eup %3870  ;;  %v2649_v58 = vsel %vm1125_vm0, %v5045_v32, %v3831_v57  ;;  %v2648_v60 = vsel %vm1125_vm0, %v5047_v34, %v3830_v48 }
 0xd7a   : > { %v2535_v18 = vmul.f32 %v3871_v17, %v3867_v11  ;;  %v2651_v6 = vsel %vm2650_vm10, %v2648_v60, %v3835_v29  ;;  %v2652_v8 = vsel %vm2650_vm10, %v2649_v58, %v3836_v30 }
 0xd7c   : > { %3394 = vmatprep.mubr.msk.f32.mxu1 %vm1390_vm14, %v2535_v18 }
 0xd7d   : > { %v3873_v21 = vpop.eup %3872 }
 0xd7e   : > { %v2536_v53 = vmul.f32 %v3873_v21, %v3869_v47 }
 0xd80   : > { %3395 = vmatmul.mubr.msk.f32.vlgmr.msra.gmra.mrb[18].mxu1 %vm1390_vm14, %v2536_v53 }
 0xe53   : > { %v3396_v55 = vpop.f32.mrb[18].mxu1 }
 0xe54   : > { %v2615_v56 = vpop.f32.mrb[19].mxu1 }
 0xe55   : > { %v3837_v37 = vpack.i.bf16 %v3396_v55, %v2615_v56 }
 0xe57   : > { %3838 = vrot.lane.b32.xlu1 %v3837_v37, %s4233_s10  ;;  %s3034_s10 = sshll.u32 %s5371_s7, 8  ;;  %s4138_s7 = sshll.u32 %s4244_s9, 4  ;;  %s4139_s7 = int_to_ptr.vmem [resolvable:$false] %s4138_s7 }
 0xe58   : > { %s5240_s5 = scalar_lea.hbm %s5415_s14, %s3034_s10  ;;  %s4140_s1 = scalar_lea.vmem %s4139_s7, 512 }
 0xe59   : > { %p4141_p8 = scmp.lt.s32.totalorder %s5235_s27, %s4139_s7  ;;  %p4142_p7 = scmp.lt.s32.totalorder %s4140_s1, %s4134_s20 }
 0xe5b   : > { %p4143_p0 = por %p4142_p7, %p4141_p8 }
 0xe5d   : > { %p4144_p4 = pnand %p4143_p0, %p4137_p1 }
 0xec9   : > { %v3839_v14 = vpop.permute.xlu1 %3838 }
 0xeca   : > { %v3841_v0 = vunpack.i.h.bf16 %v3839_v14  ;;  %v3840_v16 = vunpack.i.l.bf16 %v3839_v14 }
 0xecc   : > { %v2654_v3 = vsel %vm2653_vm12, %v2651_v6, %v3840_v16  ;;  %v2655_v20 = vsel %vm2653_vm12, %v2652_v8, %v3841_v0 }
 0xecd   : > { %3429 = vmatprep.mubr.f32.mxu0 %v2654_v3 }
 0xece   : > { %3430 = vmatmul.mubr.f32.vlgmr.msra.gmra.mrb[12].mxu0 %v2655_v20 }
 0xfa1   : > { %v3431_v32 = vpop.f32.mrb[12].mxu0 }
 0xfa2   : > { %2748 = vst [vmem:[%s674_s11 + $0x8] sm:$0xff] %v3431_v32  ;;  %v2738_v34 = vpop.f32.mrb[13].mxu0 }
 0xfa3   : > { %2747 = vst [vmem:[%s674_s11] sm:$0xff] %v2738_v34 }
 0xfa4   : > { %4147 = shalt.err (!%p4144_p4)
}
 0xfa5   : > { %s4148_s22 = scalar_lea.hbm %s5240_s5, 256  ;;  %s4152_s23 = scalar_lea.hbm %s5415_s14, 512 }
 0xfa6   : > { %p4149_p9 = scmp.ne.s32.totalorder %s5240_s5, %s4148_s22  ;;  %p4153_p2 = scmp.lt.u32.totalorder %s5240_s5, %s5415_s14 }
 0xfa7   : > { %p4154_p6 = scmp.lt.u32.totalorder %s4152_s23, %s4148_s22  ;;  %p4156_p5 = scmp.lt.u32.totalorder %s4148_s22, %s5240_s5 }
 0xfa8   : > { %p4150_p13 = pnand %p4149_p9, %p5416_p12 }
 0xfa9   : > { %p4155_p10 = por %p4154_p6, %p4153_p2 }
 0xfaa   : > { %p4151_p11 = pneg %p4150_p13 }
 0xfab   : > { %p4157_p3 = por %p4156_p5, %p4155_p10 }
 0xfad   : > { %p4158_p1 = pnand %p4157_p3, %p4151_p11 }
 0xfaf   : > { %4161 = shalt.err (!%p4158_p1)
}
 0xfb0   : > { %s4245_s18 = smov 128  }
 0xfb1   : > { %3684 = dma.vmem_to_hbm [thread:$0]  (%p5416_p12), %s5235_s27, 256, %s5240_s5, %s2750_s21, %s4245_s18, %s4245_s18, %s4241_s19  }
 0xfb2 PF: > { %s5417_s28 = sld [smem:[#allocation25_spill]]  ;;  %s5418_s11 = sld [smem:[#allocation27_spill]] }
 0xfb3   : > { %p5420_p7 = scmp.ge.s32.totalorder %s4220_s16, 2 }
 0xfb8   : > { %s2778_s10 = sand.u32 1, %s5417_s28   ;;  %p5419_p8 = scmp.ne.s32.totalorder %s5418_s11, 0 }
 0xfb9   : > { %s2779_s24 = scalar_lea.sflag [#allocation4], %s2778_s10 }
 0xfba   : > { %p3716_p0 = pnand %p5420_p7, %p5419_p8 }
 0xfbc   : > { %4203 = dma.done.wait (!%p3716_p0), %s2779_s24, 256  }
 0xfbd   : > { %4205 = vsyncadd (!%p3716_p0), %s2779_s24, 4294967040  ;;  %s5421_s16 = sld [smem:[#allocation28_spill]]  ;;  %s5422_s26 = sld [smem:[#allocation29_spill]] }
 0xfbe   : > { %s5423_s29 = smov %s4212_s30  ;;  %s5424_s30 = smov %s4216_s15 }
 0xfc3   : > { %p35_p4 = scmp.ge.s32.totalorder %s5421_s16, 4   ;;  %s5425_s15 = smov %s5422_s26 }
 0xfc5   :  { %37 = sbr.rel (!%p35_p4) target bundleno = 22 (0x16), region = 178 }
 0xfcc   :  { %2784 = vsyncpa [#allocation3], 1 }
 0xfcd   :  { %2786 = vsyncpa [#allocation3 + $0x1], 1 }
 0xfce   :  { %2787 = vsyncpa [#allocation6], 1 }
 0xfcf   :  { %2789 = vsyncpa [#allocation6 + $0x1], 1 }
 0xfd0   :  { %2790 = vsyncpa [#allocation9], 1 }
 0xfd1   :  { %2792 = vsyncpa [#allocation9 + $0x1], 1 }
 0xfd2   :  { %2793 = vsyncpa [#allocation12], 1 }
 0xfd3   :  { %2794 = vsyncpa [#allocation15], 1 }
 0xfd4   :  { %2795 = vsyncpa [#allocation4], 1 }
 0xfd5   :  { %2797 = vsyncpa [#allocation4 + $0x1], 1 }

</bundles_post_ra>
